<compile_context>
chip_gen: v6e
topology: v6e:2x2x1
jax: 0.10.0
libtpu: 0.0.40
codegen_flags: <defaults>
</compile_context>

<pallas_src>
import jax
import jax.numpy as jnp
from jax.experimental import pallas as pl
from jax.experimental.pallas import tpu as pltpu


def _f(x):
    # f(x) = 2*sin(x) + x**0.8   (target function from the original script)
    return 2.0 * jnp.sin(x) + x ** 0.8


# ---------------------------------------------------------------------------
# Kernels
# ---------------------------------------------------------------------------

def nw_shared_kernel(c_ref, q_ref, k_ref, v_ref, o_ref):
    # Shared keys/values path (keys/values identical for every query row).
    # Queries live on the LANE axis -> lane-dense (1, tq) output block.
    #   c_ref : (1,) SMEM   pre-folded scale  c = -0.5 * w * w
    #   q_ref : (1, tq)
    #   k_ref : (n_kv, 1)   broadcast across lanes in-kernel
    #   v_ref : (n_kv, 1)
    #   o_ref : (1, tq)
    c = c_ref[0]
    d = q_ref[...] - k_ref[...]                             # (n_kv, tq)
    s = d * d * c                                           # scores (<= 0)
    m = jnp.max(s, axis=0, keepdims=True)                   # stable softmax max
    e = jnp.exp(s - m)                                      # (n_kv, tq)
    denom = jnp.sum(e, axis=0, keepdims=True)               # (1, tq)
    num = jnp.sum(e * v_ref[...], axis=0, keepdims=True)    # fused attn @ values
    o_ref[...] = num / denom                                # exact divide (1e-5 tol)


def nw_rowmajor_kernel(c_ref, q_ref, k_ref, v_ref, o_ref, m_sc, l_sc, num_sc):
    # Per-row keys/values path, natural (n_q, n_kv) layout (no wrapper-side
    # transpose), online-softmax reduction over n_kv chunks (grid axis 1).
    #   c_ref : (1,) SMEM
    #   q_ref : (tq, 1)
    #   k_ref : (tq, tkv)
    #   v_ref : (tq, tkv)
    #   o_ref : (tq, 1)
    #   m_sc / l_sc / num_sc : (tq, 1) VMEM accumulators
    kv = pl.program_id(1)

    @pl.when(kv == 0)
    def _():
        m_sc[...] = jnp.full_like(m_sc, -jnp.inf)
        l_sc[...] = jnp.zeros_like(l_sc)
        num_sc[...] = jnp.zeros_like(num_sc)

    c = c_ref[0]
    d = q_ref[...] - k_ref[...]                              # (tq, tkv)
    s = d * d * c
    m_new = jnp.maximum(m_sc[...], jnp.max(s, axis=1, keepdims=True))
    alpha = jnp.exp(m_sc[...] - m_new)                       # rescale old accums
    p = jnp.exp(s - m_new)
    l_sc[...] = alpha * l_sc[...] + jnp.sum(p, axis=1, keepdims=True)
    num_sc[...] = alpha * num_sc[...] + jnp.sum(p * v_ref[...], axis=1, keepdims=True)
    m_sc[...] = m_new

    @pl.when(kv == pl.num_programs(1) - 1)
    def _():
        o_ref[...] = num_sc[...] / l_sc[...]


# ---------------------------------------------------------------------------
# Tile / chip helpers
# ---------------------------------------------------------------------------

def _chip_params():
    """(per-step VMEM budget in bytes, is_megacore)."""
    vmem_bytes = 128 * 1024 * 1024            # v5e / v6e physical default
    try:
        vmem_bytes = int(pltpu.get_tpu_info().vmem_capacity_bytes)
    except Exception:
        pass
    megacore = False
    try:
        kind = jax.devices()[0].device_kind.lower()
        megacore = ("v4" in kind) or ("v5p" in kind) or ("v7" in kind)
    except Exception:
        pass
    # Use half of physical VMEM as the working budget (double-buffering +
    # compiler headroom).  On v7x (64 MiB) this naturally halves the tile.
    budget = max(8 * 1024 * 1024, vmem_bytes // 2)
    return budget, megacore


def _pick_tile(n, align, max_tile):
    """Largest t dividing n with (t % align == 0 or t == n) and t <= max_tile.
    Returns None if no aligned divisor fits."""
    if n <= max_tile:
        return n
    best = None
    t = align
    limit = min(n, max_tile)
    while t <= limit:
        if n % t == 0:
            best = t
        t += align
    return best


# ---------------------------------------------------------------------------
# Wrapper
# ---------------------------------------------------------------------------

def nw_kernel_regression(queries, keys, values, w, *, tq=None, tkv=None):
    """queries: (n_q,), keys/values: (n_q, n_kv) (PyTorch module signature) or
    shared (1, n_kv)/(n_kv,), w: scalar / (1,) parameter.  Returns (n_q,)."""
    queries = jnp.asarray(queries, jnp.float32)
    keys = jnp.asarray(keys, jnp.float32)
    values = jnp.asarray(values, jnp.float32)
    if keys.ndim == 1:
        keys = keys[None, :]
    if values.ndim == 1:
        values = values[None, :]

    n_q = queries.shape[0]
    n_rows, n_kv = keys.shape
    assert values.shape == keys.shape
    assert n_rows in (1, n_q), "keys rows must be 1 (shared) or n_q (per-row)"
    shared = n_rows == 1

    # Fold the softmax scale once on the host; scores = (q - k)^2 * c.
    w1 = jnp.reshape(jnp.asarray(w, jnp.float32), (1,))
    c = (-0.5) * w1 * w1

    budget, megacore = _chip_params()

    if shared:
        # --- shared path: queries lane-dense, tiny (n_kv, 1) k/v column -----
        per_lane_bytes = 5 * n_kv * 4                 # ~5 live (n_kv, tq) f32 tiles
        if tq is None:
            max_tq = max(128, budget // per_lane_bytes)
            tq = _pick_tile(n_q, 128, max_tq) or n_q
            if megacore and n_q // tq < 2:            # shard across both TCs (v7x)
                tq2 = _pick_tile(n_q, 128, max(128, n_q // 2))
                if tq2 is not None:
                    tq = tq2
        assert n_q % tq == 0
        assert tq == n_q or tq % 128 == 0
        grid = (n_q // tq,)

        qT = queries.reshape(1, n_q)                  # lane-dense queries
        kT = keys.reshape(n_kv, 1)                    # tiny column -> free reshape
        vT = values.reshape(n_kv, 1)

        cost = pl.CostEstimate(
            flops=8 * n_q * n_kv,
            transcendentals=n_q * n_kv,
            bytes_accessed=4 * (2 * n_q + 2 * n_kv),
        )
        out = pl.pallas_call(
            nw_shared_kernel,
            out_shape=jax.ShapeDtypeStruct((1, n_q), jnp.float32),
            grid=grid,
            in_specs=[
                pl.BlockSpec(memory_space=pltpu.MemorySpace.SMEM),   # c (scalar path)
                pl.BlockSpec((1, tq), lambda i: (0, i)),             # queries tile
                pl.BlockSpec((n_kv, 1), lambda i: (0, 0)),           # keys column
                pl.BlockSpec((n_kv, 1), lambda i: (0, 0)),           # values column
            ],
            out_specs=pl.BlockSpec((1, tq), lambda i: (0, i)),       # lane-dense out
            compiler_params=pltpu.CompilerParams(
                dimension_semantics=("parallel",),
                vmem_limit_bytes=int(budget),
            ),
            cost_estimate=cost,
        )(c, qT, kT, vT)
        return out.reshape(n_q)

    # --- per-row path: natural (n_q, n_kv) layout, no wrapper transpose -----
    # Per step VMEM ~ (k + v double-buffered + ~4 temporaries) * tq * tkv * 4 B.
    factor = 8 * 4
    if tkv is None:
        tkv = n_kv
        if factor * 8 * tkv > budget and n_kv > 128:          # chunk n_kv
            tkv = _pick_tile(n_kv, 128, max(128, budget // (factor * 8))) or n_kv
    if tq is None:
        max_tq = max(8, budget // (factor * tkv))
        tq = _pick_tile(n_q, 8, max_tq) or n_q
        if megacore and n_q // tq < 2:                        # shard across TCs (v7x)
            tq2 = _pick_tile(n_q, 8, max(8, n_q // 2))
            if tq2 is not None:
                tq = tq2
    assert n_q % tq == 0 and n_kv % tkv == 0
    assert tq == n_q or tq % 8 == 0
    assert tkv == n_kv or tkv % 128 == 0
    grid = (n_q // tq, n_kv // tkv)

    q2 = queries.reshape(n_q, 1)

    cost = pl.CostEstimate(
        flops=8 * n_q * n_kv,
        transcendentals=n_q * n_kv,
        bytes_accessed=4 * (2 * n_q + 2 * n_q * n_kv),
    )
    out = pl.pallas_call(
        nw_rowmajor_kernel,
        out_shape=jax.ShapeDtypeStruct((n_q, 1), jnp.float32),
        grid=grid,
        in_specs=[
            pl.BlockSpec(memory_space=pltpu.MemorySpace.SMEM),       # c (scalar path)
            pl.BlockSpec((tq, 1), lambda i, j: (i, 0)),              # queries column
            pl.BlockSpec((tq, tkv), lambda i, j: (i, j)),            # keys (natural)
            pl.BlockSpec((tq, tkv), lambda i, j: (i, j)),            # values (natural)
        ],
        out_specs=pl.BlockSpec((tq, 1), lambda i, j: (i, 0)),
        scratch_shapes=[
            pltpu.VMEM((tq, 1), jnp.float32),    # running max
            pltpu.VMEM((tq, 1), jnp.float32),    # running denom
            pltpu.VMEM((tq, 1), jnp.float32),    # running numerator
        ],
        compiler_params=pltpu.CompilerParams(
            dimension_semantics=("parallel", "arbitrary"),
            vmem_limit_bytes=int(budget),
        ),
        cost_estimate=cost,
    )(c, q2, keys, values)
    return out.reshape(n_q)


def nw_reference(queries, keys, values, w):
    q2 = queries.reshape(-1, 1)
    scores = -(((q2 - keys) * w) ** 2) / 2.0
    attn = jax.nn.softmax(scores, axis=1)
    return jnp.sum(attn * values, axis=1)


if __name__ == "__main__":
    # Small deterministic problem consistent with the original script:
    # n_test query points; n_train (key, value) training pairs per row.
    n_test = 256     # query positions
    n_train = 50     # training samples (matches the original n_train = 50)

    key = jax.random.PRNGKey(0)
    k_train, k_noise, k_w = jax.random.split(key, 3)

    x_train = jnp.sort(jax.random.uniform(k_train, (n_train,)) * 5.0)
    y_train = _f(x_train) + 0.5 * jax.random.normal(k_noise, (n_train,))
    x_test = jnp.arange(n_test, dtype=jnp.float32) * (5.0 / n_test)

    # Deterministic init of the (1,)-shaped learnable parameter w.
    w = jax.random.uniform(k_w, (1,), dtype=jnp.float32)

    # General path: per-row keys/values exactly as the PyTorch module signature
    # (keys = x_train.repeat((n_test, 1)), values = y_train.repeat((n_test, 1))).
    keys_full = jnp.tile(x_train[None, :], (n_test, 1))
    values_full = jnp.tile(y_train[None, :], (n_test, 1))
    out_full = nw_kernel_regression(x_test, keys_full, values_full, w)

    # Fast path: shared keys/values passed once (no duplicated HBM traffic).
    out_shared = nw_kernel_regression(x_test, x_train[None, :], y_train[None, :], w)

    out_full, out_shared = jax.block_until_ready((out_full, out_shared))

    ref = nw_reference(x_test, keys_full, values_full, w[0])
    assert out_full.shape == (n_test,)
    assert out_shared.shape == (n_test,)
    assert jnp.allclose(out_full, ref, atol=1e-5, rtol=1e-5), "per-row path mismatch"
    assert jnp.allclose(out_shared, ref, atol=1e-5, rtol=1e-5), "shared-path mismatch"

    print("KERNEL_OK")
</pallas_src>

<mosaic_0001>
module attributes {stable_mosaic.version = 11 : i64} {
  func.func @nw_rowmajor_kernel(%arg0: i32, %arg1: i32, %arg2: memref<1xf32, #tpu.memory_space<smem>>, %arg3: memref<256x1xf32, #tpu.memory_space<vmem>>, %arg4: memref<256x50xf32, #tpu.memory_space<vmem>>, %arg5: memref<256x50xf32, #tpu.memory_space<vmem>>, %arg6: memref<256x1xf32, #tpu.memory_space<vmem>>, %arg7: memref<256x1xf32, #tpu.memory_space<vmem>>, %arg8: memref<256x1xf32, #tpu.memory_space<vmem>>, %arg9: memref<256x1xf32, #tpu.memory_space<vmem>>) attributes {dimension_semantics = [#tpu.dimension_semantics<parallel>, #tpu.dimension_semantics<arbitrary>], iteration_bounds = array<i64: 1, 1>, scalar_prefetch = 0 : i64, scratch_operands = 3 : i64, tpu.core_type = #tpu.core_type<tc>, window_params = [{transform_indices = @transform_0, window_bounds = array<i64: 1>}, {transform_indices = @transform_1, window_bounds = array<i64: 256, 1>}, {transform_indices = @transform_2, window_bounds = array<i64: 256, 50>}, {transform_indices = @transform_3, window_bounds = array<i64: 256, 50>}, {transform_indices = @transform_4, window_bounds = array<i64: 256, 1>}]} {
    %c0_i32 = arith.constant 0 : i32
    %0 = arith.cmpi eq, %arg1, %c0_i32 : i32
    %1 = arith.extui %0 : i1 to i32
    %c0_i32_0 = arith.constant 0 : i32
    %2 = arith.cmpi ne, %1, %c0_i32_0 : i32
    scf.if %2 {
      %cst_25 = arith.constant 0xFF800000 : f32
      %39 = vector.broadcast %cst_25 : f32 to vector<256x1xf32>
      %c0_26 = arith.constant 0 : index
      %c0_27 = arith.constant 0 : index
      %40 = vector.load %arg7[%c0_26, %c0_27] : memref<256x1xf32, #tpu.memory_space<vmem>>, vector<256x1xf32>
      tpu.vector_store %arg7[%c0_26, %c0_27], %39 {strides = array<i32>} : memref<256x1xf32, #tpu.memory_space<vmem>>, vector<256x1xf32>,
      %cst_28 = arith.constant 0.000000e+00 : f32
      %41 = vector.broadcast %cst_28 : f32 to vector<256x1xf32>
      %c0_29 = arith.constant 0 : index
      %c0_30 = arith.constant 0 : index
      %42 = vector.load %arg8[%c0_29, %c0_30] : memref<256x1xf32, #tpu.memory_space<vmem>>, vector<256x1xf32>
      tpu.vector_store %arg8[%c0_29, %c0_30], %41 {strides = array<i32>} : memref<256x1xf32, #tpu.memory_space<vmem>>, vector<256x1xf32>,
      %cst_31 = arith.constant 0.000000e+00 : f32
      %43 = vector.broadcast %cst_31 : f32 to vector<256x1xf32>
      %c0_32 = arith.constant 0 : index
      %c0_33 = arith.constant 0 : index
      %44 = vector.load %arg9[%c0_32, %c0_33] : memref<256x1xf32, #tpu.memory_space<vmem>>, vector<256x1xf32>
      tpu.vector_store %arg9[%c0_32, %c0_33], %43 {strides = array<i32>} : memref<256x1xf32, #tpu.memory_space<vmem>>, vector<256x1xf32>,
    } else {
    }
    %c0 = arith.constant 0 : index
    %3 = memref.load %arg2[%c0] : memref<1xf32, #tpu.memory_space<smem>>
    %c0_1 = arith.constant 0 : index
    %c0_2 = arith.constant 0 : index
    %4 = vector.load %arg3[%c0_1, %c0_2] : memref<256x1xf32, #tpu.memory_space<vmem>>, vector<256x1xf32>
    %c0_3 = arith.constant 0 : index
    %c0_4 = arith.constant 0 : index
    %5 = vector.load %arg4[%c0_3, %c0_4] : memref<256x50xf32, #tpu.memory_space<vmem>>, vector<256x50xf32>
    %6 = vector.broadcast %4 : vector<256x1xf32> to vector<256x50xf32>
    %7 = arith.subf %6, %5 : vector<256x50xf32>
    %8 = arith.mulf %7, %7 : vector<256x50xf32>
    %9 = vector.broadcast %3 : f32 to vector<256x50xf32>
    %10 = arith.mulf %8, %9 : vector<256x50xf32>
    %c0_5 = arith.constant 0 : index
    %c0_6 = arith.constant 0 : index
    %11 = vector.load %arg7[%c0_5, %c0_6] : memref<256x1xf32, #tpu.memory_space<vmem>>, vector<256x1xf32>
    %cst = arith.constant dense<0xFF800000> : vector<256xf32>
    %12 = vector.multi_reduction <maximumf>, %10, %cst [1] : vector<256x50xf32> to vector<256xf32>
    %13 = vector.shape_cast %12 : vector<256xf32> to vector<256x1xf32>
    %14 = arith.maximumf %11, %13 : vector<256x1xf32>
    %c0_7 = arith.constant 0 : index
    %c0_8 = arith.constant 0 : index
    %15 = vector.load %arg7[%c0_7, %c0_8] : memref<256x1xf32, #tpu.memory_space<vmem>>, vector<256x1xf32>
    %16 = arith.subf %15, %14 : vector<256x1xf32>
    %17 = math.exp %16 : vector<256x1xf32>
    %18 = vector.broadcast %14 : vector<256x1xf32> to vector<256x50xf32>
    %19 = arith.subf %10, %18 : vector<256x50xf32>
    %20 = math.exp %19 : vector<256x50xf32>
    %c0_9 = arith.constant 0 : index
    %c0_10 = arith.constant 0 : index
    %21 = vector.load %arg8[%c0_9, %c0_10] : memref<256x1xf32, #tpu.memory_space<vmem>>, vector<256x1xf32>
    %22 = arith.mulf %17, %21 : vector<256x1xf32>
    %cst_11 = arith.constant dense<0.000000e+00> : vector<256xf32>
    %23 = vector.multi_reduction <add>, %20, %cst_11 [1] : vector<256x50xf32> to vector<256xf32>
    %24 = vector.shape_cast %23 : vector<256xf32> to vector<256x1xf32>
    %25 = arith.addf %22, %24 : vector<256x1xf32>
    %c0_12 = arith.constant 0 : index
    %c0_13 = arith.constant 0 : index
    %26 = vector.load %arg8[%c0_12, %c0_13] : memref<256x1xf32, #tpu.memory_space<vmem>>, vector<256x1xf32>
    tpu.vector_store %arg8[%c0_12, %c0_13], %25 {strides = array<i32>} : memref<256x1xf32, #tpu.memory_space<vmem>>, vector<256x1xf32>,
    %c0_14 = arith.constant 0 : index
    %c0_15 = arith.constant 0 : index
    %27 = vector.load %arg9[%c0_14, %c0_15] : memref<256x1xf32, #tpu.memory_space<vmem>>, vector<256x1xf32>
    %28 = arith.mulf %17, %27 : vector<256x1xf32>
    %c0_16 = arith.constant 0 : index
    %c0_17 = arith.constant 0 : index
    %29 = vector.load %arg5[%c0_16, %c0_17] : memref<256x50xf32, #tpu.memory_space<vmem>>, vector<256x50xf32>
    %30 = arith.mulf %20, %29 : vector<256x50xf32>
    %cst_18 = arith.constant dense<0.000000e+00> : vector<256xf32>
    %31 = vector.multi_reduction <add>, %30, %cst_18 [1] : vector<256x50xf32> to vector<256xf32>
    %32 = vector.shape_cast %31 : vector<256xf32> to vector<256x1xf32>
    %33 = arith.addf %28, %32 : vector<256x1xf32>
    %c0_19 = arith.constant 0 : index
    %c0_20 = arith.constant 0 : index
    %34 = vector.load %arg9[%c0_19, %c0_20] : memref<256x1xf32, #tpu.memory_space<vmem>>, vector<256x1xf32>
    tpu.vector_store %arg9[%c0_19, %c0_20], %33 {strides = array<i32>} : memref<256x1xf32, #tpu.memory_space<vmem>>, vector<256x1xf32>,
    %c0_21 = arith.constant 0 : index
    %c0_22 = arith.constant 0 : index
    %35 = vector.load %arg7[%c0_21, %c0_22] : memref<256x1xf32, #tpu.memory_space<vmem>>, vector<256x1xf32>
    tpu.vector_store %arg7[%c0_21, %c0_22], %14 {strides = array<i32>} : memref<256x1xf32, #tpu.memory_space<vmem>>, vector<256x1xf32>,
    %c0_i32_23 = arith.constant 0 : i32
    %36 = arith.cmpi eq, %arg1, %c0_i32_23 : i32
    %37 = arith.extui %36 : i1 to i32
    %c0_i32_24 = arith.constant 0 : i32
    %38 = arith.cmpi ne, %37, %c0_i32_24 : i32
    scf.if %38 {
      %c0_25 = arith.constant 0 : index
      %c0_26 = arith.constant 0 : index
      %39 = vector.load %arg9[%c0_25, %c0_26] : memref<256x1xf32, #tpu.memory_space<vmem>>, vector<256x1xf32>
      %c0_27 = arith.constant 0 : index
      %c0_28 = arith.constant 0 : index
      %40 = vector.load %arg8[%c0_27, %c0_28] : memref<256x1xf32, #tpu.memory_space<vmem>>, vector<256x1xf32>
      %41 = arith.divf %39, %40 : vector<256x1xf32>
      %c0_29 = arith.constant 0 : index
      %c0_30 = arith.constant 0 : index
      %42 = vector.load %arg6[%c0_29, %c0_30] : memref<256x1xf32, #tpu.memory_space<vmem>>, vector<256x1xf32>
      tpu.vector_store %arg6[%c0_29, %c0_30], %41 {strides = array<i32>} : memref<256x1xf32, #tpu.memory_space<vmem>>, vector<256x1xf32>,
    } else {
    }
    return
  }
  func.func @transform_0(%arg0: i32, %arg1: i32) -> i32 {
    %c0_i32 = arith.constant 0 : i32
    %c0_i32_0 = arith.constant 0 : i32
    return %c0_i32 : i32
  }
  func.func @transform_1(%arg0: i32, %arg1: i32) -> (i32, i32) {
    %c0_i32 = arith.constant 0 : i32
    %c0_i32_0 = arith.constant 0 : i32
    return %arg0, %c0_i32 : i32, i32
  }
  func.func @transform_2(%arg0: i32, %arg1: i32) -> (i32, i32) {
    %c0_i32 = arith.constant 0 : i32
    return %arg0, %arg1 : i32, i32
  }
  func.func @transform_3(%arg0: i32, %arg1: i32) -> (i32, i32) {
    %c0_i32 = arith.constant 0 : i32
    return %arg0, %arg1 : i32, i32
  }
  func.func @transform_4(%arg0: i32, %arg1: i32) -> (i32, i32) {
    %c0_i32 = arith.constant 0 : i32
    %c0_i32_0 = arith.constant 0 : i32
    return %arg0, %c0_i32 : i32, i32
  }
}

</mosaic_0001>

<bundles_post_ra>
// kernel: tpu_custom_call.1
= control target key start
LH: loop header
LB: loop body
LE: loop exit
PB: predicated region body
PF: predicated region fallthrough
CT: control target
= control target key end

     0   :  { %v1863_v0 = vmov 0   ;;  %vm22_vm0 = vcmask 7168   ;;  %v1864_v33 = vmov -inf   ;;  %vm473_vm1 = vcmask 408576   ;;  %s3482_s1 = inlined_call_operand.vmem [shape: f32[256,1], index: 1, kind: input, shape index: {}]   ;;  %s3483_s2 = inlined_call_operand.vmem [shape: f32[256,50], index: 2, kind: input, shape index: {}]   ;;  %s3484_s0 = inlined_call_operand.<no memory space> [shape: f32[1], index: 0, kind: input, shape index: {}]   ;;  %s3485_s3 = inlined_call_operand.vmem [shape: f32[256,50], index: 3, kind: input, shape index: {}]   ;;  %s3486_s4 = inlined_call_operand.vmem [shape: f32[256,1], index: 4, kind: output, shape index: {}]  }
   0x1   :  { %1670 = vset.pattern.permute.xlu1 %v1863_v0  ;;  %1669 = vset.pattern.permute.xlu0 %v1863_v0  ;;  %v122_v1 = vld [vmem:[%s3482_s1 + $0x10] sm:$0xff]  ;;  %v120_v2 = vld [vmem:[%s3482_s1] sm:$0xff]  ;;  %v123_v3 = vld [vmem:[%s3482_s1 + $0x18] sm:$0xff]  ;;  %23 = vst.msk [vmem:[#allocation2] sm:$0xff] %vm22_vm0, %v1864_v33  ;;  %v2034_v42 = vstv %s3484_s0 }
   0x2   :  { %196 = vperm.xlu1 %1670, %v122_v1   ;;  %186 = vperm.xlu0 %1669, %v120_v2   ;;  %v121_v4 = vld [vmem:[%s3482_s1 + $0x8] sm:$0xff]  ;;  %v124_v6 = vld [vmem:[%s3482_s1 + $0x20] sm:$0xff]  ;;  %v127_v7 = vld [vmem:[%s3482_s1 + $0x38] sm:$0xff]  ;;  %24 = vst.msk [vmem:[#allocation2 + $0x8] sm:$0xff] %vm22_vm0, %v1864_v33 }
   0x3   :  { %v125_v5 = vld [vmem:[%s3482_s1 + $0x28] sm:$0xff]  ;;  %v126_v8 = vld [vmem:[%s3482_s1 + $0x30] sm:$0xff]  ;;  %v128_v10 = vld [vmem:[%s3482_s1 + $0x40] sm:$0xff]  ;;  %25 = vst.msk [vmem:[#allocation2 + $0x10] sm:$0xff] %vm22_vm0, %v1864_v33 }
   0x4   :  { %v129_v9 = vld [vmem:[%s3482_s1 + $0x48] sm:$0xff]  ;;  %v131_v11 = vld [vmem:[%s3482_s1 + $0x58] sm:$0xff]  ;;  %v130_v12 = vld [vmem:[%s3482_s1 + $0x50] sm:$0xff]  ;;  %26 = vst.msk [vmem:[#allocation2 + $0x18] sm:$0xff] %vm22_vm0, %v1864_v33 }
   0x5   :  { %v133_v13 = vld [vmem:[%s3482_s1 + $0x68] sm:$0xff]  ;;  %v132_v14 = vld [vmem:[%s3482_s1 + $0x60] sm:$0xff]  ;;  %v135_v15 = vld [vmem:[%s3482_s1 + $0x78] sm:$0xff]  ;;  %27 = vst.msk [vmem:[#allocation2 + $0x20] sm:$0xff] %vm22_vm0, %v1864_v33 }
   0x6   :  { %201 = vperm.xlu1 %1670, %v123_v3   ;;  %191 = vperm.xlu0 %1669, %v121_v4   ;;  %v134_v16 = vld [vmem:[%s3482_s1 + $0x70] sm:$0xff]  ;;  %v137_v17 = vld [vmem:[%s3482_s1 + $0x88] sm:$0xff]  ;;  %v136_v18 = vld [vmem:[%s3482_s1 + $0x80] sm:$0xff]  ;;  %28 = vst.msk [vmem:[#allocation2 + $0x28] sm:$0xff] %vm22_vm0, %v1864_v33 }
   0x7   :  { %v139_v19 = vld [vmem:[%s3482_s1 + $0x98] sm:$0xff]  ;;  %v138_v20 = vld [vmem:[%s3482_s1 + $0x90] sm:$0xff]  ;;  %v141_v21 = vld [vmem:[%s3482_s1 + $0xa8] sm:$0xff]  ;;  %29 = vst.msk [vmem:[#allocation2 + $0x30] sm:$0xff] %vm22_vm0, %v1864_v33 }
   0x8   :  { %v140_v22 = vld [vmem:[%s3482_s1 + $0xa0] sm:$0xff]  ;;  %v143_v23 = vld [vmem:[%s3482_s1 + $0xb8] sm:$0xff]  ;;  %v142_v24 = vld [vmem:[%s3482_s1 + $0xb0] sm:$0xff]  ;;  %30 = vst.msk [vmem:[#allocation2 + $0x38] sm:$0xff] %vm22_vm0, %v1864_v33 }
   0x9   :  { %v145_v25 = vld [vmem:[%s3482_s1 + $0xc8] sm:$0xff]  ;;  %v144_v26 = vld [vmem:[%s3482_s1 + $0xc0] sm:$0xff]  ;;  %v147_v27 = vld [vmem:[%s3482_s1 + $0xd8] sm:$0xff]  ;;  %31 = vst.msk [vmem:[#allocation2 + $0x40] sm:$0xff] %vm22_vm0, %v1864_v33 }
   0xa   :  { %211 = vperm.xlu1 %1670, %v125_v5   ;;  %206 = vperm.xlu0 %1669, %v124_v6   ;;  %v146_v28 = vld [vmem:[%s3482_s1 + $0xd0] sm:$0xff]  ;;  %v149_v29 = vld [vmem:[%s3482_s1 + $0xe8] sm:$0xff]  ;;  %v148_v30 = vld [vmem:[%s3482_s1 + $0xe0] sm:$0xff]  ;;  %32 = vst.msk [vmem:[#allocation2 + $0x48] sm:$0xff] %vm22_vm0, %v1864_v33 }
   0xb   :  { %v151_v31 = vld [vmem:[%s3482_s1 + $0xf8] sm:$0xff]  ;;  %v150_v32 = vld [vmem:[%s3482_s1 + $0xf0] sm:$0xff]  ;;  %33 = vst.msk [vmem:[#allocation2 + $0x50] sm:$0xff] %vm22_vm0, %v1864_v33  ;;  %34 = vst.msk [vmem:[#allocation2 + $0x58] sm:$0xff] %vm22_vm0, %v1864_v33 }
   0xc   :  { %35 = vst.msk [vmem:[#allocation2 + $0x60] sm:$0xff] %vm22_vm0, %v1864_v33  ;;  %36 = vst.msk [vmem:[#allocation2 + $0x68] sm:$0xff] %vm22_vm0, %v1864_v33  ;;  %v154_v34 = vld [vmem:[%s3483_s2 + $0x10] sm:$0xff]  ;;  %v152_v35 = vld [vmem:[%s3483_s2] sm:$0xff] }
   0xd   :  { %37 = vst.msk [vmem:[#allocation2 + $0x70] sm:$0xff] %vm22_vm0, %v1864_v33  ;;  %38 = vst.msk [vmem:[#allocation2 + $0x78] sm:$0xff] %vm22_vm0, %v1864_v33  ;;  %v155_v40 = vld [vmem:[%s3483_s2 + $0x18] sm:$0xff]  ;;  %v153_v41 = vld [vmem:[%s3483_s2 + $0x8] sm:$0xff] }
   0xe   :  { %221 = vperm.xlu1 %1670, %v127_v7   ;;  %216 = vperm.xlu0 %1669, %v126_v8   ;;  %39 = vst.msk [vmem:[#allocation2 + $0x80] sm:$0xff] %vm22_vm0, %v1864_v33  ;;  %40 = vst.msk [vmem:[#allocation2 + $0x88] sm:$0xff] %vm22_vm0, %v1864_v33  ;;  %v157_v51 = vld [vmem:[%s3483_s2 + $0x28] sm:$0xff]  ;;  %v156_v52 = vld [vmem:[%s3483_s2 + $0x20] sm:$0xff] }
   0xf   :  { %41 = vst.msk [vmem:[#allocation2 + $0x90] sm:$0xff] %vm22_vm0, %v1864_v33  ;;  %42 = vst.msk [vmem:[#allocation2 + $0x98] sm:$0xff] %vm22_vm0, %v1864_v33  ;;  %v159_v62 = vld [vmem:[%s3483_s2 + $0x38] sm:$0xff]  ;;  %v158_v63 = vld [vmem:[%s3483_s2 + $0x30] sm:$0xff] }
  0x10   :  { %43 = vst.msk [vmem:[#allocation2 + $0xa0] sm:$0xff] %vm22_vm0, %v1864_v33  ;;  %44 = vst.msk [vmem:[#allocation2 + $0xa8] sm:$0xff] %vm22_vm0, %v1864_v33 }
  0x11   :  { %45 = vst.msk [vmem:[#allocation2 + $0xb0] sm:$0xff] %vm22_vm0, %v1864_v33  ;;  %46 = vst.msk [vmem:[#allocation2 + $0xb8] sm:$0xff] %vm22_vm0, %v1864_v33 }
  0x12   :  { %231 = vperm.xlu1 %1670, %v129_v9   ;;  %226 = vperm.xlu0 %1669, %v128_v10   ;;  %47 = vst.msk [vmem:[#allocation2 + $0xc0] sm:$0xff] %vm22_vm0, %v1864_v33  ;;  %48 = vst.msk [vmem:[#allocation2 + $0xc8] sm:$0xff] %vm22_vm0, %v1864_v33  ;;  %v161_v9 = vld [vmem:[%s3483_s2 + $0x48] sm:$0xff]  ;;  %v160_v10 = vld [vmem:[%s3483_s2 + $0x40] sm:$0xff] }
  0x13   :  { %49 = vst.msk [vmem:[#allocation2 + $0xd0] sm:$0xff] %vm22_vm0, %v1864_v33  ;;  %50 = vst.msk [vmem:[#allocation2 + $0xd8] sm:$0xff] %vm22_vm0, %v1864_v33 }
  0x14   :  { %51 = vst.msk [vmem:[#allocation2 + $0xe0] sm:$0xff] %vm22_vm0, %v1864_v33  ;;  %52 = vst.msk [vmem:[#allocation2 + $0xe8] sm:$0xff] %vm22_vm0, %v1864_v33 }
  0x15   :  { %53 = vst.msk [vmem:[#allocation2 + $0xf0] sm:$0xff] %vm22_vm0, %v1864_v33  ;;  %54 = vst.msk [vmem:[#allocation2 + $0xf8] sm:$0xff] %vm22_vm0, %v1864_v33  ;;  %v165_v33 = vld [vmem:[%s3483_s2 + $0x68] sm:$0xff] }
  0x16   :  { %241 = vperm.xlu1 %1670, %v131_v11   ;;  %236 = vperm.xlu0 %1669, %v130_v12  }
  0x1a   :  { %251 = vperm.xlu1 %1670, %v133_v13   ;;  %246 = vperm.xlu0 %1669, %v132_v14  }
  0x1e   :  { %261 = vperm.xlu1 %1670, %v135_v15   ;;  %256 = vperm.xlu0 %1669, %v134_v16  }
  0x22   :  { %271 = vperm.xlu1 %1670, %v137_v17   ;;  %266 = vperm.xlu0 %1669, %v136_v18  }
  0x26   :  { %281 = vperm.xlu1 %1670, %v139_v19   ;;  %276 = vperm.xlu0 %1669, %v138_v20  }
  0x2a   :  { %291 = vperm.xlu1 %1670, %v141_v21   ;;  %286 = vperm.xlu0 %1669, %v140_v22   ;;  %v163_v21 = vld [vmem:[%s3483_s2 + $0x58] sm:$0xff]  ;;  %v162_v22 = vld [vmem:[%s3483_s2 + $0x50] sm:$0xff] }
  0x2e   :  { %301 = vperm.xlu1 %1670, %v143_v23   ;;  %296 = vperm.xlu0 %1669, %v142_v24  }
  0x32   :  { %311 = vperm.xlu1 %1670, %v145_v25   ;;  %306 = vperm.xlu0 %1669, %v144_v26  }
  0x36   :  { %321 = vperm.xlu1 %1670, %v147_v27   ;;  %316 = vperm.xlu0 %1669, %v146_v28  }
  0x3a   :  { %331 = vperm.xlu1 %1670, %v149_v29   ;;  %326 = vperm.xlu0 %1669, %v148_v30  }
  0x3e   :  { %341 = vperm.xlu1 %1670, %v151_v31   ;;  %336 = vperm.xlu0 %1669, %v150_v32  }
  0x7d   :  { %v197_v36 = vpop.permute.xlu1 %196  ;;  %v187_v37 = vpop.permute.xlu0 %186 }
  0x7e   :  { %v346_v38 = vsub.f32 %v197_v36, %v154_v34  ;;  %v344_v39 = vsub.f32 %v187_v37, %v152_v35  ;;  %v164_v34 = vld [vmem:[%s3483_s2 + $0x60] sm:$0xff] }
  0x80   :  { %v378_v43 = vmul.f32 %v346_v38, %v346_v38  ;;  %v376_v44 = vmul.f32 %v344_v39, %v344_v39 }
  0x81   :  { %v202_v45 = vpop.permute.xlu1 %201  ;;  %v192_v46 = vpop.permute.xlu0 %191 }
  0x82   :  { %v347_v47 = vsub.f32 %v202_v45, %v155_v40  ;;  %v345_v48 = vsub.f32 %v192_v46, %v153_v41  ;;  %v2037_v49 = vmul.f32 %v2034_v42, %v376_v44  ;;  %v2040_v50 = vmul.f32 %v2034_v42, %v378_v43  ;;  %v167_v46 = vld [vmem:[%s3483_s2 + $0x78] sm:$0xff] }
  0x84   :  { %v379_v53 = vmul.f32 %v347_v47, %v347_v47  ;;  %v377_v54 = vmul.f32 %v345_v48, %v345_v48  ;;  %v474_v55 = vsel %vm473_vm1, %v2037_v49, -inf  ;;  %v480_v61 = vsel %vm473_vm1, %v2040_v50, -inf  ;;  %v166_v47 = vld [vmem:[%s3483_s2 + $0x70] sm:$0xff] }
  0x85   :  { %v212_v56 = vpop.permute.xlu1 %211  ;;  %v207_v57 = vpop.permute.xlu0 %206  ;;  %475 = vmax.xlane.f32.xlu0 %v474_v55 }
  0x86   :  { %v349_v58 = vsub.f32 %v212_v56, %v157_v51  ;;  %v348_v59 = vsub.f32 %v207_v57, %v156_v52  ;;  %v2051_v60 = vmul.f32 %v2034_v42, %v377_v54  ;;  %v2062_v0 = vmul.f32 %v2034_v42, %v379_v53 }
  0x88   :  { %v381_v1 = vmul.f32 %v349_v58, %v349_v58  ;;  %v380_v2 = vmul.f32 %v348_v59, %v348_v59  ;;  %v477_v3 = vsel %vm473_vm1, %v2051_v60, -inf  ;;  %v483_v11 = vsel %vm473_vm1, %v2062_v0, -inf }
  0x89   :  { %v222_v4 = vpop.permute.xlu1 %221  ;;  %v217_v5 = vpop.permute.xlu0 %216  ;;  %478 = vmax.xlane.f32.xlu1 %v477_v3  ;;  %481 = vmax.xlane.f32.xlu0 %v480_v61  ;;  %v2136_v61 = vld [vmem:[%s3483_s2 + $0x88] sm:$0xff] }
  0x8a   :  { %v351_v6 = vsub.f32 %v222_v4, %v159_v62  ;;  %v350_v7 = vsub.f32 %v217_v5, %v158_v63  ;;  %v2067_v8 = vmul.f32 %v2034_v42, %v380_v2  ;;  %v2080_v15 = vmul.f32 %v2034_v42, %v381_v1  ;;  %v2141_v62 = vld [vmem:[%s3483_s2 + $0x80] sm:$0xff] }
  0x8b   :  { %v1865_v5 = vmov 0.0  }
  0x8c   :  { %v383_v12 = vmul.f32 %v351_v6, %v351_v6  ;;  %v382_v13 = vmul.f32 %v350_v7, %v350_v7  ;;  %v486_v14 = vsel %vm473_vm1, %v2067_v8, -inf  ;;  %v489_v27 = vsel %vm473_vm1, %v2080_v15, -inf  ;;  %55 = vst.msk [vmem:[#allocation3] sm:$0xff] %vm22_vm0, %v1865_v5  ;;  %56 = vst.msk [vmem:[#allocation3 + $0x8] sm:$0xff] %vm22_vm0, %v1865_v5 }
  0x8d   :  { %v232_v16 = vpop.permute.xlu1 %231  ;;  %v227_v17 = vpop.permute.xlu0 %226  ;;  %487 = vmax.xlane.f32.xlu1 %v486_v14  ;;  %484 = vmax.xlane.f32.xlu0 %v483_v11  ;;  %57 = vst.msk [vmem:[#allocation3 + $0x10] sm:$0xff] %vm22_vm0, %v1865_v5  ;;  %58 = vst.msk [vmem:[#allocation3 + $0x18] sm:$0xff] %vm22_vm0, %v1865_v5 }
  0x8e   :  { %v353_v18 = vsub.f32 %v232_v16, %v161_v9  ;;  %v352_v19 = vsub.f32 %v227_v17, %v160_v10  ;;  %v2083_v20 = vmul.f32 %v2034_v42, %v382_v13  ;;  %v2092_v23 = vmul.f32 %v2034_v42, %v383_v12  ;;  %59 = vst.msk [vmem:[#allocation3 + $0x20] sm:$0xff] %vm22_vm0, %v1865_v5  ;;  %v171_v12 = vld [vmem:[%s3483_s2 + $0x98] sm:$0xff]  ;;  %v170_v13 = vld [vmem:[%s3483_s2 + $0x90] sm:$0xff] }
  0x8f   :  { %60 = vst.msk [vmem:[#allocation3 + $0x28] sm:$0xff] %vm22_vm0, %v1865_v5  ;;  %61 = vst.msk [vmem:[#allocation3 + $0x30] sm:$0xff] %vm22_vm0, %v1865_v5 }
  0x90   :  { %v385_v24 = vmul.f32 %v353_v18, %v353_v18  ;;  %v384_v25 = vmul.f32 %v352_v19, %v352_v19  ;;  %v492_v26 = vsel %vm473_vm1, %v2083_v20, -inf  ;;  %v495_v35 = vsel %vm473_vm1, %v2092_v23, -inf  ;;  %62 = vst.msk [vmem:[#allocation3 + $0x38] sm:$0xff] %vm22_vm0, %v1865_v5  ;;  %63 = vst.msk [vmem:[#allocation3 + $0x40] sm:$0xff] %vm22_vm0, %v1865_v5 }
  0x91   :  { %v242_v28 = vpop.permute.xlu1 %241  ;;  %v237_v29 = vpop.permute.xlu0 %236  ;;  %493 = vmax.xlane.f32.xlu1 %v492_v26  ;;  %490 = vmax.xlane.f32.xlu0 %v489_v27  ;;  %64 = vst.msk [vmem:[#allocation3 + $0x48] sm:$0xff] %vm22_vm0, %v1865_v5  ;;  %65 = vst.msk [vmem:[#allocation3 + $0x50] sm:$0xff] %vm22_vm0, %v1865_v5  ;;  %v173_v27 = vld [vmem:[%s3483_s2 + $0xa8] sm:$0xff] }
  0x92   :  { %v355_v30 = vsub.f32 %v242_v28, %v163_v21  ;;  %v354_v31 = vsub.f32 %v237_v29, %v162_v22  ;;  %v2099_v32 = vmul.f32 %v2034_v42, %v384_v25  ;;  %v2112_v39 = vmul.f32 %v2034_v42, %v385_v24  ;;  %66 = vst.msk [vmem:[#allocation3 + $0x58] sm:$0xff] %vm22_vm0, %v1865_v5  ;;  %v172_v28 = vld [vmem:[%s3483_s2 + $0xa0] sm:$0xff] }
  0x93   :  { %67 = vst.msk [vmem:[#allocation3 + $0x60] sm:$0xff] %vm22_vm0, %v1865_v5  ;;  %68 = vst.msk [vmem:[#allocation3 + $0x68] sm:$0xff] %vm22_vm0, %v1865_v5 }
  0x94   :  { %v387_v36 = vmul.f32 %v355_v30, %v355_v30  ;;  %v386_v37 = vmul.f32 %v354_v31, %v354_v31  ;;  %v498_v38 = vsel %vm473_vm1, %v2099_v32, -inf  ;;  %v501_v54 = vsel %vm473_vm1, %v2112_v39, -inf  ;;  %69 = vst.msk [vmem:[#allocation3 + $0x70] sm:$0xff] %vm22_vm0, %v1865_v5  ;;  %70 = vst.msk [vmem:[#allocation3 + $0x78] sm:$0xff] %vm22_vm0, %v1865_v5 }
  0x95   :  { %v252_v40 = vpop.permute.xlu1 %251  ;;  %v247_v41 = vpop.permute.xlu0 %246  ;;  %499 = vmax.xlane.f32.xlu1 %v498_v38  ;;  %496 = vmax.xlane.f32.xlu0 %v495_v35  ;;  %71 = vst.msk [vmem:[#allocation3 + $0x80] sm:$0xff] %vm22_vm0, %v1865_v5  ;;  %72 = vst.msk [vmem:[#allocation3 + $0x88] sm:$0xff] %vm22_vm0, %v1865_v5 }
  0x96   :  { %v357_v43 = vsub.f32 %v252_v40, %v165_v33  ;;  %v356_v44 = vsub.f32 %v247_v41, %v164_v34  ;;  %v2115_v45 = vmul.f32 %v2034_v42, %v386_v37  ;;  %v2124_v48 = vmul.f32 %v2034_v42, %v387_v36  ;;  %73 = vst.msk [vmem:[#allocation3 + $0x90] sm:$0xff] %vm22_vm0, %v1865_v5  ;;  %v175_v41 = vld [vmem:[%s3483_s2 + $0xb8] sm:$0xff] }
  0x97   :  { %74 = vst.msk [vmem:[#allocation3 + $0x98] sm:$0xff] %vm22_vm0, %v1865_v5  ;;  %75 = vst.msk [vmem:[#allocation3 + $0xa0] sm:$0xff] %vm22_vm0, %v1865_v5 }
  0x98   :  { %v389_v51 = vmul.f32 %v357_v43, %v357_v43  ;;  %v388_v52 = vmul.f32 %v356_v44, %v356_v44  ;;  %v504_v53 = vsel %vm473_vm1, %v2115_v45, -inf  ;;  %v2145_v63 = vsel %vm473_vm1, %v2124_v48, -inf  ;;  %76 = vst.msk [vmem:[#allocation3 + $0xa8] sm:$0xff] %vm22_vm0, %v1865_v5  ;;  %77 = vst.msk [vmem:[#allocation3 + $0xb0] sm:$0xff] %vm22_vm0, %v1865_v5  ;;  %v174_v43 = vld [vmem:[%s3483_s2 + $0xb0] sm:$0xff] }
  0x99   :  { %v262_v55 = vpop.permute.xlu1 %261  ;;  %v257_v56 = vpop.permute.xlu0 %256  ;;  %505 = vmax.xlane.f32.xlu1 %v504_v53  ;;  %502 = vmax.xlane.f32.xlu0 %v501_v54  ;;  %78 = vst.msk [vmem:[#allocation3 + $0xb8] sm:$0xff] %vm22_vm0, %v1865_v5  ;;  %79 = vst.msk [vmem:[#allocation3 + $0xc0] sm:$0xff] %vm22_vm0, %v1865_v5 }
  0x9a   :  { %v359_v57 = vsub.f32 %v262_v55, %v167_v46  ;;  %v358_v58 = vsub.f32 %v257_v56, %v166_v47  ;;  %v2131_v59 = vmul.f32 %v2034_v42, %v388_v52  ;;  %v2156_v4 = vmul.f32 %v2034_v42, %v389_v51  ;;  %80 = vst.msk [vmem:[#allocation3 + $0xc8] sm:$0xff] %vm22_vm0, %v1865_v5 }
  0x9b   :  { %81 = vst.msk [vmem:[#allocation3 + $0xd0] sm:$0xff] %vm22_vm0, %v1865_v5  ;;  %82 = vst.msk [vmem:[#allocation3 + $0xd8] sm:$0xff] %vm22_vm0, %v1865_v5 }
  0x9c   :  { %v2147_v1 = vmul.f32 %v359_v57, %v359_v57  ;;  %v2149_v2 = vmul.f32 %v358_v58, %v358_v58  ;;  %v2153_v3 = vsel %vm473_vm1, %v2131_v59, -inf  ;;  %83 = vst.msk [vmem:[#allocation3 + $0xe0] sm:$0xff] %vm22_vm0, %v1865_v5  ;;  %84 = vst.msk [vmem:[#allocation3 + $0xe8] sm:$0xff] %vm22_vm0, %v1865_v5  ;;  %v513_v19 = vsel %vm473_vm1, %v2156_v4, -inf  ;;  %v177_v58 = vld [vmem:[%s3483_s2 + $0xc8] sm:$0xff] }
  0x9d   :  { %85 = vst.msk [vmem:[#allocation3 + $0xf0] sm:$0xff] %vm22_vm0, %v1865_v5  ;;  %86 = vst.msk [vmem:[#allocation3 + $0xf8] sm:$0xff] %vm22_vm0, %v1865_v5  ;;  %v272_v6 = vpop.permute.xlu1 %271  ;;  %v267_v7 = vpop.permute.xlu0 %266  ;;  %511 = vmax.xlane.f32.xlu1 %v2153_v3  ;;  %508 = vmax.xlane.f32.xlu0 %v2145_v63 }
  0x9e   :  { %87 = vst.msk [vmem:[#allocation4] sm:$0xff] %vm22_vm0, %v1865_v5  ;;  %88 = vst.msk [vmem:[#allocation4 + $0x8] sm:$0xff] %vm22_vm0, %v1865_v5  ;;  %v361_v9 = vsub.f32 %v272_v6, %v2136_v61  ;;  %v360_v10 = vsub.f32 %v267_v7, %v2141_v62  ;;  %v2292_v11 = vmul.f32 %v2034_v42, %v2149_v2  ;;  %v176_v61 = vld [vmem:[%s3483_s2 + $0xc0] sm:$0xff] }
  0x9f   :  { %89 = vst.msk [vmem:[#allocation4 + $0x10] sm:$0xff] %vm22_vm0, %v1865_v5  ;;  %90 = vst.msk [vmem:[#allocation4 + $0x18] sm:$0xff] %vm22_vm0, %v1865_v5  ;;  %v2302_v14 = vmul.f32 %v2034_v42, %v2147_v1 }
  0xa0   :  { %91 = vst.msk [vmem:[#allocation4 + $0x20] sm:$0xff] %vm22_vm0, %v1865_v5  ;;  %92 = vst.msk [vmem:[#allocation4 + $0x28] sm:$0xff] %vm22_vm0, %v1865_v5  ;;  %v393_v16 = vmul.f32 %v361_v9, %v361_v9  ;;  %v392_v17 = vmul.f32 %v360_v10, %v360_v10  ;;  %v516_v18 = vsel %vm473_vm1, %v2292_v11, -inf }
  0xa1   :  { %93 = vst.msk [vmem:[#allocation4 + $0x30] sm:$0xff] %vm22_vm0, %v1865_v5  ;;  %94 = vst.msk [vmem:[#allocation4 + $0x38] sm:$0xff] %vm22_vm0, %v1865_v5  ;;  %v282_v21 = vpop.permute.xlu1 %281  ;;  %v277_v22 = vpop.permute.xlu0 %276  ;;  %517 = vmax.xlane.f32.xlu1 %v516_v18  ;;  %514 = vmax.xlane.f32.xlu0 %v513_v19  ;;  %v519_v29 = vsel %vm473_vm1, %v2302_v14, -inf }
  0xa2   :  { %95 = vst.msk [vmem:[#allocation4 + $0x40] sm:$0xff] %vm22_vm0, %v1865_v5  ;;  %96 = vst.msk [vmem:[#allocation4 + $0x48] sm:$0xff] %vm22_vm0, %v1865_v5  ;;  %v363_v24 = vsub.f32 %v282_v21, %v171_v12  ;;  %v362_v25 = vsub.f32 %v277_v22, %v170_v13  ;;  %v2309_v26 = vmul.f32 %v2034_v42, %v392_v17  ;;  %v179_v12 = vld [vmem:[%s3483_s2 + $0xd8] sm:$0xff]  ;;  %v178_v13 = vld [vmem:[%s3483_s2 + $0xd0] sm:$0xff] }
  0xa3   :  { %97 = vst.msk [vmem:[#allocation4 + $0x50] sm:$0xff] %vm22_vm0, %v1865_v5  ;;  %98 = vst.msk [vmem:[#allocation4 + $0x58] sm:$0xff] %vm22_vm0, %v1865_v5  ;;  %v2322_v34 = vmul.f32 %v2034_v42, %v393_v16 }
  0xa4   :  { %99 = vst.msk [vmem:[#allocation4 + $0x60] sm:$0xff] %vm22_vm0, %v1865_v5  ;;  %100 = vst.msk [vmem:[#allocation4 + $0x68] sm:$0xff] %vm22_vm0, %v1865_v5  ;;  %v395_v30 = vmul.f32 %v363_v24, %v363_v24  ;;  %v394_v31 = vmul.f32 %v362_v25, %v362_v25  ;;  %v522_v33 = vsel %vm473_vm1, %v2309_v26, -inf }
  0xa5   :  { %101 = vst.msk [vmem:[#allocation4 + $0x70] sm:$0xff] %vm22_vm0, %v1865_v5  ;;  %102 = vst.msk [vmem:[#allocation4 + $0x78] sm:$0xff] %vm22_vm0, %v1865_v5  ;;  %v292_v35 = vpop.permute.xlu1 %291  ;;  %v287_v36 = vpop.permute.xlu0 %286  ;;  %523 = vmax.xlane.f32.xlu1 %v522_v33  ;;  %520 = vmax.xlane.f32.xlu0 %v519_v29  ;;  %v525_v52 = vsel %vm473_vm1, %v2322_v34, -inf  ;;  %v181_v29 = vld [vmem:[%s3483_s2 + $0xe8] sm:$0xff] }
  0xa6   :  { %103 = vst.msk [vmem:[#allocation4 + $0x80] sm:$0xff] %vm22_vm0, %v1865_v5  ;;  %104 = vst.msk [vmem:[#allocation4 + $0x88] sm:$0xff] %vm22_vm0, %v1865_v5  ;;  %v365_v37 = vsub.f32 %v292_v35, %v173_v27  ;;  %v364_v38 = vsub.f32 %v287_v36, %v172_v28  ;;  %v2325_v40 = vmul.f32 %v2034_v42, %v394_v31 }
  0xa7   :  { %105 = vst.msk [vmem:[#allocation4 + $0x90] sm:$0xff] %vm22_vm0, %v1865_v5  ;;  %106 = vst.msk [vmem:[#allocation4 + $0x98] sm:$0xff] %vm22_vm0, %v1865_v5  ;;  %v2334_v44 = vmul.f32 %v2034_v42, %v395_v30  ;;  %v180_v30 = vld [vmem:[%s3483_s2 + $0xe0] sm:$0xff] }
  0xa8   :  { %107 = vst.msk [vmem:[#allocation4 + $0xa0] sm:$0xff] %vm22_vm0, %v1865_v5  ;;  %108 = vst.msk [vmem:[#allocation4 + $0xa8] sm:$0xff] %vm22_vm0, %v1865_v5  ;;  %v397_v46 = vmul.f32 %v365_v37, %v365_v37  ;;  %v396_v47 = vmul.f32 %v364_v38, %v364_v38  ;;  %v528_v51 = vsel %vm473_vm1, %v2325_v40, -inf }
  0xa9   :  { %109 = vst.msk [vmem:[#allocation4 + $0xb0] sm:$0xff] %vm22_vm0, %v1865_v5  ;;  %110 = vst.msk [vmem:[#allocation4 + $0xb8] sm:$0xff] %vm22_vm0, %v1865_v5  ;;  %v302_v53 = vpop.permute.xlu1 %301  ;;  %v297_v54 = vpop.permute.xlu0 %296  ;;  %529 = vmax.xlane.f32.xlu1 %v528_v51  ;;  %526 = vmax.xlane.f32.xlu0 %v525_v52  ;;  %v531_v62 = vsel %vm473_vm1, %v2334_v44, -inf  ;;  %v183_v51 = vld [vmem:[%s3483_s2 + $0xf8] sm:$0xff]  ;;  %v182_v52 = vld [vmem:[%s3483_s2 + $0xf0] sm:$0xff] }
  0xaa   :  { %111 = vst.msk [vmem:[#allocation4 + $0xc0] sm:$0xff] %vm22_vm0, %v1865_v5  ;;  %112 = vst.msk [vmem:[#allocation4 + $0xc8] sm:$0xff] %vm22_vm0, %v1865_v5  ;;  %v367_v55 = vsub.f32 %v302_v53, %v175_v41  ;;  %v366_v56 = vsub.f32 %v297_v54, %v174_v43  ;;  %v2341_v57 = vmul.f32 %v2034_v42, %v396_v47 }
  0xab   :  { %113 = vst.msk [vmem:[#allocation4 + $0xd0] sm:$0xff] %vm22_vm0, %v1865_v5  ;;  %114 = vst.msk [vmem:[#allocation4 + $0xd8] sm:$0xff] %vm22_vm0, %v1865_v5  ;;  %v2354_v3 = vmul.f32 %v2034_v42, %v397_v46 }
  0xac   :  { %115 = vst.msk [vmem:[#allocation4 + $0xe0] sm:$0xff] %vm22_vm0, %v1865_v5  ;;  %116 = vst.msk [vmem:[#allocation4 + $0xe8] sm:$0xff] %vm22_vm0, %v1865_v5  ;;  %v399_v63 = vmul.f32 %v367_v55, %v367_v55  ;;  %v398_v1 = vmul.f32 %v366_v56, %v366_v56  ;;  %v534_v2 = vsel %vm473_vm1, %v2341_v57, -inf }
  0xad   :  { %117 = vst.msk [vmem:[#allocation4 + $0xf0] sm:$0xff] %vm22_vm0, %v1865_v5  ;;  %118 = vst.msk [vmem:[#allocation4 + $0xf8] sm:$0xff] %vm22_vm0, %v1865_v5  ;;  %v312_v5 = vpop.permute.xlu1 %311  ;;  %v307_v6 = vpop.permute.xlu0 %306  ;;  %535 = vmax.xlane.f32.xlu1 %v534_v2  ;;  %532 = vmax.xlane.f32.xlu0 %v531_v62  ;;  %v537_v21 = vsel %vm473_vm1, %v2354_v3, -inf }
  0xae   :  { %v369_v7 = vsub.f32 %v312_v5, %v177_v58  ;;  %v368_v9 = vsub.f32 %v307_v6, %v176_v61  ;;  %v2357_v10 = vmul.f32 %v2034_v42, %v398_v1  ;;  %v2366_v16 = vmul.f32 %v2034_v42, %v399_v63 }
  0xb0   :  { %v401_v17 = vmul.f32 %v369_v7, %v369_v7  ;;  %v400_v18 = vmul.f32 %v368_v9, %v368_v9  ;;  %v540_v19 = vsel %vm473_vm1, %v2357_v10, -inf  ;;  %v543_v31 = vsel %vm473_vm1, %v2366_v16, -inf }
  0xb1   :  { %v322_v22 = vpop.permute.xlu1 %321  ;;  %v317_v24 = vpop.permute.xlu0 %316  ;;  %541 = vmax.xlane.f32.xlu1 %v540_v19  ;;  %538 = vmax.xlane.f32.xlu0 %v537_v21 }
  0xb2   :  { %v371_v25 = vsub.f32 %v322_v22, %v179_v12  ;;  %v370_v27 = vsub.f32 %v317_v24, %v178_v13  ;;  %v2373_v28 = vmul.f32 %v2034_v42, %v400_v18  ;;  %v2386_v37 = vmul.f32 %v2034_v42, %v401_v17  ;;  %v2426_v22 = vld [vmem:[#allocation2] sm:$0xff] }
  0xb4   :  { %v403_v33 = vmul.f32 %v371_v25, %v371_v25  ;;  %v402_v35 = vmul.f32 %v370_v27, %v370_v27  ;;  %v546_v36 = vsel %vm473_vm1, %v2373_v28, -inf  ;;  %v549_v58 = vsel %vm473_vm1, %v2386_v37, -inf  ;;  %v2433_v27 = vld [vmem:[#allocation2 + $0x10] sm:$0xff] }
  0xb5   :  { %v332_v38 = vpop.permute.xlu1 %331  ;;  %v327_v41 = vpop.permute.xlu0 %326  ;;  %547 = vmax.xlane.f32.xlu1 %v546_v36  ;;  %544 = vmax.xlane.f32.xlu0 %v543_v31  ;;  %v2446_v36 = vld [vmem:[#allocation2 + $0x20] sm:$0xff] }
  0xb6   :  { %v373_v43 = vsub.f32 %v332_v38, %v181_v29  ;;  %v372_v46 = vsub.f32 %v327_v41, %v180_v30  ;;  %v2389_v47 = vmul.f32 %v2034_v42, %v402_v35  ;;  %v2398_v53 = vmul.f32 %v2034_v42, %v403_v33  ;;  %v2448_v38 = vld [vmem:[#allocation2 + $0x18] sm:$0xff]  ;;  %v2546_v41 = vld [vmem:[#allocation2 + $0x70] sm:$0xff] }
  0xb7   :  { %3541 = vst [vmem:[#allocation14_spill] sm:$0xff] %v2546_v41 }
  0xb8   :  { %v405_v54 = vmul.f32 %v373_v43, %v373_v43  ;;  %v404_v55 = vmul.f32 %v372_v46, %v372_v46  ;;  %v552_v56 = vsel %vm473_vm1, %v2389_v47, -inf  ;;  %v555_v5 = vsel %vm473_vm1, %v2398_v53, -inf  ;;  %v2548_v43 = vld [vmem:[#allocation2 + $0x68] sm:$0xff] }
  0xb9   :  { %v342_v61 = vpop.permute.xlu1 %341  ;;  %v337_v62 = vpop.permute.xlu0 %336  ;;  %553 = vmax.xlane.f32.xlu1 %v552_v56  ;;  %550 = vmax.xlane.f32.xlu0 %v549_v58  ;;  %v2468_v56 = vld [vmem:[#allocation2 + $0x28] sm:$0xff]  ;;  %3542 = vst [vmem:[#allocation15_spill] sm:$0xff] %v2548_v43 }
  0xba   :  { %v375_v63 = vsub.f32 %v342_v61, %v183_v51  ;;  %v374_v1 = vsub.f32 %v337_v62, %v182_v52  ;;  %v2405_v2 = vmul.f32 %v2034_v42, %v404_v55  ;;  %v2412_v12 = vmul.f32 %v2034_v42, %v405_v54  ;;  %v2466_v55 = vld [vmem:[#allocation2 + $0x30] sm:$0xff] }
  0xbc   :  { %v407_v6 = vmul.f32 %v375_v63, %v375_v63  ;;  %v406_v7 = vmul.f32 %v374_v1, %v374_v1  ;;  %v558_v9 = vsel %vm473_vm1, %v2405_v2, -inf  ;;  %v561_v19 = vsel %vm473_vm1, %v2412_v12, -inf }
  0xbd   :  { %559 = vmax.xlane.f32.xlu1 %v558_v9  ;;  %556 = vmax.xlane.f32.xlu0 %v555_v5  ;;  %v2526_v9 = vld [vmem:[#allocation2 + $0x60] sm:$0xff] }
  0xbe   :  { %v2415_v13 = vmul.f32 %v2034_v42, %v406_v7  ;;  %v2418_v17 = vmul.f32 %v2034_v42, %v407_v6  ;;  %v2431_v42 = vld [vmem:[#allocation2 + $0x8] sm:$0xff]  ;;  %v2486_v6 = vld [vmem:[#allocation2 + $0x40] sm:$0xff]  ;;  %v2488_v7 = vld [vmem:[#allocation2 + $0x38] sm:$0xff]  ;;  %3537 = vst [vmem:[#allocation10_spill] sm:$0xff] %v2526_v9 }
  0xc0   :  { %v564_v18 = vsel %vm473_vm1, %v2415_v13, -inf  ;;  %v567_v21 = vsel %vm473_vm1, %v2418_v17, -inf }
  0xc1   :  { %565 = vmax.xlane.f32.xlu1 %v564_v18  ;;  %562 = vmax.xlane.f32.xlu0 %v561_v19  ;;  %v2528_v18 = vld [vmem:[#allocation2 + $0x58] sm:$0xff] }
  0xc2   :  { %3538 = vst [vmem:[#allocation11_spill] sm:$0xff] %v2528_v18 }
  0xc5   :  { %568 = vmax.xlane.f32.xlu0 %v567_v21 }
 0x10e   :  { %v476_v24 = vpop.xlane.xlu0 %475 }
 0x10f   :  { %v2429_v25 = vmax.f32 %v2426_v22, %v476_v24 }
 0x111   :  { %1467 = vst.msk [vmem:[#allocation2] sm:$0xff] %vm22_vm0, %v2429_v25  ;;  %700 = vperm.xlu1 %1670, %v2429_v25  }
 0x112   :  { %v479_v30 = vpop.xlane.xlu1 %478  ;;  %v482_v31 = vpop.xlane.xlu0 %481 }
 0x113   :  { %v2441_v33 = vmax.f32 %v2431_v42, %v479_v30  ;;  %v2444_v35 = vmax.f32 %v2433_v27, %v482_v31  ;;  %v2506_v31 = vld [vmem:[#allocation2 + $0x50] sm:$0xff] }
 0x114   :  { %3533 = vst [vmem:[#allocation6_spill] sm:$0xff] %v2506_v31 }
 0x115   :  { %1468 = vst.msk [vmem:[#allocation2 + $0x8] sm:$0xff] %vm22_vm0, %v2441_v33  ;;  %1469 = vst.msk [vmem:[#allocation2 + $0x10] sm:$0xff] %vm22_vm0, %v2444_v35  ;;  %705 = vperm.xlu0 %1669, %v2441_v33   ;;  %710 = vperm.xlu1 %1670, %v2444_v35  }
 0x116   :  { %v488_v46 = vpop.xlane.xlu1 %487  ;;  %v485_v51 = vpop.xlane.xlu0 %484 }
 0x117   :  { %v2461_v52 = vmax.f32 %v2446_v36, %v488_v46  ;;  %v2464_v54 = vmax.f32 %v2448_v38, %v485_v51  ;;  %v2508_v46 = vld [vmem:[#allocation2 + $0x48] sm:$0xff] }
 0x118   :  { %3534 = vst [vmem:[#allocation7_spill] sm:$0xff] %v2508_v46 }
 0x119   :  { %1471 = vst.msk [vmem:[#allocation2 + $0x20] sm:$0xff] %vm22_vm0, %v2461_v52  ;;  %1470 = vst.msk [vmem:[#allocation2 + $0x18] sm:$0xff] %vm22_vm0, %v2464_v54  ;;  %720 = vperm.xlu0 %1669, %v2461_v52   ;;  %715 = vperm.xlu1 %1670, %v2464_v54  }
 0x11a   :  { %v494_v62 = vpop.xlane.xlu1 %493  ;;  %v491_v63 = vpop.xlane.xlu0 %490 }
 0x11b   :  { %v2481_v1 = vmax.f32 %v2466_v55, %v494_v62  ;;  %v2484_v5 = vmax.f32 %v2468_v56, %v491_v63 }
 0x11d   :  { %1473 = vst.msk [vmem:[#allocation2 + $0x30] sm:$0xff] %vm22_vm0, %v2481_v1  ;;  %1472 = vst.msk [vmem:[#allocation2 + $0x28] sm:$0xff] %vm22_vm0, %v2484_v5  ;;  %730 = vperm.xlu0 %1669, %v2481_v1   ;;  %725 = vperm.xlu1 %1670, %v2484_v5  }
 0x11e   :  { %v500_v19 = vpop.xlane.xlu1 %499  ;;  %v497_v21 = vpop.xlane.xlu0 %496 }
 0x11f   :  { %v2501_v24 = vmax.f32 %v2486_v6, %v500_v19  ;;  %v2504_v30 = vmax.f32 %v2488_v7, %v497_v21 }
 0x121   :  { %1475 = vst.msk [vmem:[#allocation2 + $0x40] sm:$0xff] %vm22_vm0, %v2501_v24  ;;  %1474 = vst.msk [vmem:[#allocation2 + $0x38] sm:$0xff] %vm22_vm0, %v2504_v30  ;;  %740 = vperm.xlu0 %1669, %v2501_v24   ;;  %735 = vperm.xlu1 %1670, %v2504_v30  }
 0x122   :  { %v506_v63 = vpop.xlane.xlu1 %505  ;;  %v503_v19 = vpop.xlane.xlu0 %502 }
 0x123   :  { %v2521_v21 = vmax.f32 %v2506_v31, %v506_v63  ;;  %v2524_v51 = vmax.f32 %v2508_v46, %v503_v19  ;;  %v2568_v31 = vld [vmem:[#allocation2 + $0x78] sm:$0xff] }
 0x124   :  { %3546 = vst [vmem:[#allocation19_spill] sm:$0xff] %v2568_v31 }
 0x125   :  { %3535 = vst [vmem:[#allocation8_spill] sm:$0xff] %v2521_v21  ;;  %3536 = vst [vmem:[#allocation9_spill] sm:$0xff] %v2524_v51  ;;  %750 = vperm.xlu0 %1669, %v2521_v21   ;;  %745 = vperm.xlu1 %1670, %v2524_v51  }
 0x126   :  { %1477 = vst.msk [vmem:[#allocation2 + $0x50] sm:$0xff] %vm22_vm0, %v2521_v21  ;;  %1476 = vst.msk [vmem:[#allocation2 + $0x48] sm:$0xff] %vm22_vm0, %v2524_v51  ;;  %v512_v63 = vpop.xlane.xlu1 %511  ;;  %v509_v19 = vpop.xlane.xlu0 %508 }
 0x127   :  { %v2541_v61 = vmax.f32 %v2526_v9, %v512_v63  ;;  %v2544_v62 = vmax.f32 %v2528_v18, %v509_v19  ;;  %v2566_v9 = vld [vmem:[#allocation2 + $0x80] sm:$0xff]  ;;  %v2588_v18 = vld [vmem:[#allocation2 + $0x88] sm:$0xff] }
 0x128   :  { %3545 = vst [vmem:[#allocation18_spill] sm:$0xff] %v2566_v9  ;;  %3550 = vst [vmem:[#allocation23_spill] sm:$0xff] %v2588_v18 }
 0x129   :  { %3539 = vst [vmem:[#allocation12_spill] sm:$0xff] %v2541_v61  ;;  %3540 = vst [vmem:[#allocation13_spill] sm:$0xff] %v2544_v62  ;;  %760 = vperm.xlu0 %1669, %v2541_v61   ;;  %755 = vperm.xlu1 %1670, %v2544_v62  }
 0x12a   :  { %1479 = vst.msk [vmem:[#allocation2 + $0x60] sm:$0xff] %vm22_vm0, %v2541_v61  ;;  %1478 = vst.msk [vmem:[#allocation2 + $0x58] sm:$0xff] %vm22_vm0, %v2544_v62  ;;  %v518_v63 = vpop.xlane.xlu1 %517  ;;  %v515_v19 = vpop.xlane.xlu0 %514 }
 0x12b   :  { %v2561_v21 = vmax.f32 %v2546_v41, %v518_v63  ;;  %v2564_v58 = vmax.f32 %v2548_v43, %v515_v19  ;;  %v2586_v41 = vld [vmem:[#allocation2 + $0x90] sm:$0xff]  ;;  %v2608_v43 = vld [vmem:[#allocation2 + $0x98] sm:$0xff] }
 0x12c   :  { %3549 = vst [vmem:[#allocation22_spill] sm:$0xff] %v2586_v41  ;;  %3554 = vst [vmem:[#allocation27_spill] sm:$0xff] %v2608_v43 }
 0x12d   :  { %3543 = vst [vmem:[#allocation16_spill] sm:$0xff] %v2561_v21  ;;  %3544 = vst [vmem:[#allocation17_spill] sm:$0xff] %v2564_v58  ;;  %770 = vperm.xlu0 %1669, %v2561_v21   ;;  %765 = vperm.xlu1 %1670, %v2564_v58  }
 0x12e   :  { %1481 = vst.msk [vmem:[#allocation2 + $0x70] sm:$0xff] %vm22_vm0, %v2561_v21  ;;  %1480 = vst.msk [vmem:[#allocation2 + $0x68] sm:$0xff] %vm22_vm0, %v2564_v58  ;;  %v524_v63 = vpop.xlane.xlu1 %523  ;;  %v521_v19 = vpop.xlane.xlu0 %520 }
 0x12f   :  { %v2581_v62 = vmax.f32 %v2566_v9, %v524_v63  ;;  %v2584_v29 = vmax.f32 %v2568_v31, %v521_v19  ;;  %v2606_v9 = vld [vmem:[#allocation2 + $0xa0] sm:$0xff]  ;;  %v2628_v31 = vld [vmem:[#allocation2 + $0xa8] sm:$0xff] }
 0x130   :  { %3553 = vst [vmem:[#allocation26_spill] sm:$0xff] %v2606_v9  ;;  %3558 = vst [vmem:[#allocation31_spill] sm:$0xff] %v2628_v31 }
 0x131   :  { %3547 = vst [vmem:[#allocation20_spill] sm:$0xff] %v2581_v62  ;;  %3548 = vst [vmem:[#allocation21_spill] sm:$0xff] %v2584_v29  ;;  %780 = vperm.xlu0 %1669, %v2581_v62   ;;  %775 = vperm.xlu1 %1670, %v2584_v29  }
 0x132   :  { %1483 = vst.msk [vmem:[#allocation2 + $0x80] sm:$0xff] %vm22_vm0, %v2581_v62  ;;  %1482 = vst.msk [vmem:[#allocation2 + $0x78] sm:$0xff] %vm22_vm0, %v2584_v29  ;;  %v530_v63 = vpop.xlane.xlu1 %529  ;;  %v527_v19 = vpop.xlane.xlu0 %526 }
 0x133   :  { %v2601_v58 = vmax.f32 %v2586_v41, %v530_v63  ;;  %v2604_v61 = vmax.f32 %v2588_v18, %v527_v19  ;;  %v2626_v41 = vld [vmem:[#allocation2 + $0xb0] sm:$0xff]  ;;  %v2648_v18 = vld [vmem:[#allocation2 + $0xb8] sm:$0xff] }
 0x134   :  { %3557 = vst [vmem:[#allocation30_spill] sm:$0xff] %v2626_v41  ;;  %3562 = vst [vmem:[#allocation35_spill] sm:$0xff] %v2648_v18 }
 0x135   :  { %3551 = vst [vmem:[#allocation24_spill] sm:$0xff] %v2601_v58  ;;  %3552 = vst [vmem:[#allocation25_spill] sm:$0xff] %v2604_v61  ;;  %790 = vperm.xlu0 %1669, %v2601_v58   ;;  %785 = vperm.xlu1 %1670, %v2604_v61  }
 0x136   :  { %1485 = vst.msk [vmem:[#allocation2 + $0x90] sm:$0xff] %vm22_vm0, %v2601_v58  ;;  %1484 = vst.msk [vmem:[#allocation2 + $0x88] sm:$0xff] %vm22_vm0, %v2604_v61  ;;  %v536_v63 = vpop.xlane.xlu1 %535  ;;  %v533_v19 = vpop.xlane.xlu0 %532 }
 0x137   :  { %v2621_v29 = vmax.f32 %v2606_v9, %v536_v63  ;;  %v2624_v21 = vmax.f32 %v2608_v43, %v533_v19  ;;  %v2646_v9 = vld [vmem:[#allocation2 + $0xc0] sm:$0xff]  ;;  %v2668_v43 = vld [vmem:[#allocation2 + $0xc8] sm:$0xff] }
 0x138   :  { %3561 = vst [vmem:[#allocation34_spill] sm:$0xff] %v2646_v9  ;;  %3566 = vst [vmem:[#allocation39_spill] sm:$0xff] %v2668_v43 }
 0x139   :  { %3555 = vst [vmem:[#allocation28_spill] sm:$0xff] %v2621_v29  ;;  %3556 = vst [vmem:[#allocation29_spill] sm:$0xff] %v2624_v21  ;;  %800 = vperm.xlu0 %1669, %v2621_v29   ;;  %795 = vperm.xlu1 %1670, %v2624_v21  }
 0x13a   :  { %1487 = vst.msk [vmem:[#allocation2 + $0xa0] sm:$0xff] %vm22_vm0, %v2621_v29  ;;  %1486 = vst.msk [vmem:[#allocation2 + $0x98] sm:$0xff] %vm22_vm0, %v2624_v21  ;;  %v542_v63 = vpop.xlane.xlu1 %541  ;;  %v539_v19 = vpop.xlane.xlu0 %538 }
 0x13b   :  { %v2641_v61 = vmax.f32 %v2626_v41, %v542_v63  ;;  %v2644_v62 = vmax.f32 %v2628_v31, %v539_v19  ;;  %v2666_v41 = vld [vmem:[#allocation2 + $0xd0] sm:$0xff]  ;;  %v2688_v31 = vld [vmem:[#allocation2 + $0xd8] sm:$0xff] }
 0x13c   :  { %3565 = vst [vmem:[#allocation38_spill] sm:$0xff] %v2666_v41  ;;  %3570 = vst [vmem:[#allocation43_spill] sm:$0xff] %v2688_v31 }
 0x13d   :  { %3559 = vst [vmem:[#allocation32_spill] sm:$0xff] %v2641_v61  ;;  %3560 = vst [vmem:[#allocation33_spill] sm:$0xff] %v2644_v62  ;;  %810 = vperm.xlu0 %1669, %v2641_v61   ;;  %805 = vperm.xlu1 %1670, %v2644_v62  }
 0x13e   :  { %1489 = vst.msk [vmem:[#allocation2 + $0xb0] sm:$0xff] %vm22_vm0, %v2641_v61  ;;  %1488 = vst.msk [vmem:[#allocation2 + $0xa8] sm:$0xff] %vm22_vm0, %v2644_v62  ;;  %v548_v63 = vpop.xlane.xlu1 %547  ;;  %v545_v19 = vpop.xlane.xlu0 %544 }
 0x13f   :  { %v2661_v21 = vmax.f32 %v2646_v9, %v548_v63  ;;  %v2664_v58 = vmax.f32 %v2648_v18, %v545_v19  ;;  %v2686_v9 = vld [vmem:[#allocation2 + $0xe0] sm:$0xff]  ;;  %v2708_v18 = vld [vmem:[#allocation2 + $0xe8] sm:$0xff] }
 0x140   :  { %3569 = vst [vmem:[#allocation42_spill] sm:$0xff] %v2686_v9  ;;  %3574 = vst [vmem:[#allocation47_spill] sm:$0xff] %v2708_v18 }
 0x141   :  { %3563 = vst [vmem:[#allocation36_spill] sm:$0xff] %v2661_v21  ;;  %3564 = vst [vmem:[#allocation37_spill] sm:$0xff] %v2664_v58  ;;  %820 = vperm.xlu0 %1669, %v2661_v21   ;;  %815 = vperm.xlu1 %1670, %v2664_v58  }
 0x142   :  { %1491 = vst.msk [vmem:[#allocation2 + $0xc0] sm:$0xff] %vm22_vm0, %v2661_v21  ;;  %1490 = vst.msk [vmem:[#allocation2 + $0xb8] sm:$0xff] %vm22_vm0, %v2664_v58  ;;  %v554_v63 = vpop.xlane.xlu1 %553  ;;  %v551_v19 = vpop.xlane.xlu0 %550 }
 0x143   :  { %v2681_v62 = vmax.f32 %v2666_v41, %v554_v63  ;;  %v2684_v29 = vmax.f32 %v2668_v43, %v551_v19  ;;  %v2706_v41 = vld [vmem:[#allocation2 + $0xf0] sm:$0xff] }
 0x144   :  { %3573 = vst [vmem:[#allocation46_spill] sm:$0xff] %v2706_v41 }
 0x145   :  { %3567 = vst [vmem:[#allocation40_spill] sm:$0xff] %v2681_v62  ;;  %3568 = vst [vmem:[#allocation41_spill] sm:$0xff] %v2684_v29  ;;  %830 = vperm.xlu0 %1669, %v2681_v62   ;;  %825 = vperm.xlu1 %1670, %v2684_v29  }
 0x146   :  { %1493 = vst.msk [vmem:[#allocation2 + $0xd0] sm:$0xff] %vm22_vm0, %v2681_v62  ;;  %1492 = vst.msk [vmem:[#allocation2 + $0xc8] sm:$0xff] %vm22_vm0, %v2684_v29  ;;  %v560_v63 = vpop.xlane.xlu1 %559  ;;  %v557_v19 = vpop.xlane.xlu0 %556 }
 0x147   :  { %v2701_v58 = vmax.f32 %v2686_v9, %v560_v63  ;;  %v2704_v61 = vmax.f32 %v2688_v31, %v557_v19  ;;  %v2726_v9 = vld [vmem:[#allocation2 + $0xf8] sm:$0xff] }
 0x148   :  { %3577 = vst [vmem:[#allocation50_spill] sm:$0xff] %v2726_v9 }
 0x149   :  { %3571 = vst [vmem:[#allocation44_spill] sm:$0xff] %v2701_v58  ;;  %3572 = vst [vmem:[#allocation45_spill] sm:$0xff] %v2704_v61  ;;  %840 = vperm.xlu0 %1669, %v2701_v58   ;;  %835 = vperm.xlu1 %1670, %v2704_v61  }
 0x14a   :  { %1495 = vst.msk [vmem:[#allocation2 + $0xe0] sm:$0xff] %vm22_vm0, %v2701_v58  ;;  %1494 = vst.msk [vmem:[#allocation2 + $0xd8] sm:$0xff] %vm22_vm0, %v2704_v61  ;;  %v566_v63 = vpop.xlane.xlu1 %565  ;;  %v563_v19 = vpop.xlane.xlu0 %562 }
 0x14b   :  { %v2721_v29 = vmax.f32 %v2706_v41, %v566_v63  ;;  %v2724_v21 = vmax.f32 %v2708_v18, %v563_v19 }
 0x14d   :  { %3575 = vst [vmem:[#allocation48_spill] sm:$0xff] %v2721_v29  ;;  %3576 = vst [vmem:[#allocation49_spill] sm:$0xff] %v2724_v21  ;;  %850 = vperm.xlu0 %1669, %v2721_v29   ;;  %845 = vperm.xlu1 %1670, %v2724_v21  }
 0x14e   :  { %1497 = vst.msk [vmem:[#allocation2 + $0xf0] sm:$0xff] %vm22_vm0, %v2721_v29  ;;  %1496 = vst.msk [vmem:[#allocation2 + $0xe8] sm:$0xff] %vm22_vm0, %v2724_v21  ;;  %v569_v63 = vpop.xlane.xlu0 %568 }
 0x14f   :  { %v2739_v19 = vmax.f32 %v2726_v9, %v569_v63 }
 0x151   :  { %3578 = vst [vmem:[#allocation51_spill] sm:$0xff] %v2739_v19  ;;  %1498 = vst.msk [vmem:[#allocation2 + $0xf8] sm:$0xff] %vm22_vm0, %v2739_v19  ;;  %855 = vperm.xlu1 %1670, %v2739_v19  }
 0x18c   :  { %v701_v58 = vpop.permute.xlu1 %700 }
 0x18d   :  { %v858_v41 = vsub.f32 %v2037_v49, %v701_v58 }
 0x18f   :  { %v890_v18 = vmul.f32 1.442695, %v858_v41 }
 0x190   :  { %v711_v61 = vpop.permute.xlu1 %710  ;;  %v706_v29 = vpop.permute.xlu0 %705 }
 0x191   :  { %1671 = vpow2.f32 %v890_v18  ;;  %v860_v21 = vsub.f32 %v2040_v50, %v711_v61  ;;  %v859_v63 = vsub.f32 %v2051_v60, %v706_v29 }
 0x193   :  { %v894_v31 = vmul.f32 1.442695, %v860_v21  ;;  %v892_v43 = vmul.f32 1.442695, %v859_v63 }
 0x194   :  { %v716_v51 = vpop.permute.xlu1 %715  ;;  %v721_v62 = vpop.permute.xlu0 %720 }
 0x195   :  { %1673 = vpow2.f32 %v894_v31  ;;  %v861_v9 = vsub.f32 %v2062_v0, %v716_v51  ;;  %v862_v19 = vsub.f32 %v2067_v8, %v721_v62 }
 0x196   :  { %1675 = vpow2.f32 %v892_v43 }
 0x197   :  { %v896_v46 = vmul.f32 1.442695, %v861_v9  ;;  %v898_v49 = vmul.f32 1.442695, %v862_v19 }
 0x198   :  { %v726_v41 = vpop.permute.xlu1 %725  ;;  %v731_v58 = vpop.permute.xlu0 %730 }
 0x199   :  { %1677 = vpow2.f32 %v896_v46  ;;  %v863_v18 = vsub.f32 %v2080_v15, %v726_v41  ;;  %v864_v50 = vsub.f32 %v2083_v20, %v731_v58 }
 0x19a   :  { %1679 = vpow2.f32 %v898_v49 }
 0x19b   :  { %v900_v60 = vmul.f32 1.442695, %v863_v18  ;;  %v902_v29 = vmul.f32 1.442695, %v864_v50 }
 0x19c   :  { %v736_v61 = vpop.permute.xlu1 %735  ;;  %v741_v21 = vpop.permute.xlu0 %740 }
 0x19d   :  { %1681 = vpow2.f32 %v900_v60  ;;  %v865_v0 = vsub.f32 %v2092_v23, %v736_v61  ;;  %v866_v8 = vsub.f32 %v2099_v32, %v741_v21 }
 0x19e   :  { %v2755_v43 = vpop.eup %1671  ;;  %1683 = vpow2.f32 %v902_v29 }
 0x19f   :  { %v904_v9 = vmul.f32 1.442695, %v865_v0  ;;  %v906_v31 = vmul.f32 1.442695, %v866_v8  ;;  %v1018_v15 = vsel %vm473_vm1, %v2755_v43, 0.0 }
 0x1a0   :  { %1019 = vadd.xlane.f32.xlu0 %v1018_v15  ;;  %v746_v20 = vpop.permute.xlu1 %745  ;;  %v751_v46 = vpop.permute.xlu0 %750 }
 0x1a1   :  { %1685 = vpow2.f32 %v904_v9  ;;  %v867_v51 = vsub.f32 %v2112_v39, %v746_v20  ;;  %v868_v62 = vsub.f32 %v2115_v45, %v751_v46 }
 0x1a2   :  { %v2761_v19 = vpop.eup %1673  ;;  %1687 = vpow2.f32 %v906_v31 }
 0x1a3   :  { %v2763_v23 = vpop.eup %1675  ;;  %v908_v32 = vmul.f32 1.442695, %v867_v51  ;;  %v910_v63 = vmul.f32 1.442695, %v868_v62  ;;  %v1024_v49 = vsel %vm473_vm1, %v2761_v19, 0.0 }
 0x1a4   :  { %1025 = vadd.xlane.f32.xlu0 %v1024_v49  ;;  %v756_v41 = vpop.permute.xlu1 %755  ;;  %v1021_v58 = vsel %vm473_vm1, %v2763_v23, 0.0  ;;  %v761_v18 = vpop.permute.xlu0 %760 }
 0x1a5   :  { %1689 = vpow2.f32 %v908_v32  ;;  %v869_v39 = vsub.f32 %v2124_v48, %v756_v41  ;;  %1022 = vadd.xlane.f32.xlu1 %v1021_v58  ;;  %v870_v45 = vsub.f32 %v2131_v59, %v761_v18 }
 0x1a6   :  { %v2771_v50 = vpop.eup %1677  ;;  %1691 = vpow2.f32 %v910_v63 }
 0x1a7   :  { %v2773_v60 = vpop.eup %1679  ;;  %v912_v29 = vmul.f32 1.442695, %v869_v39  ;;  %v914_v61 = vmul.f32 1.442695, %v870_v45  ;;  %v1027_v21 = vsel %vm473_vm1, %v2771_v50, 0.0 }
 0x1a8   :  { %1028 = vadd.xlane.f32.xlu0 %v1027_v21  ;;  %v766_v0 = vpop.permute.xlu1 %765  ;;  %v1030_v8 = vsel %vm473_vm1, %v2773_v60, 0.0  ;;  %v771_v9 = vpop.permute.xlu0 %770 }
 0x1a9   :  { %1693 = vpow2.f32 %v912_v29  ;;  %v871_v48 = vsub.f32 %v2156_v4, %v766_v0  ;;  %1031 = vadd.xlane.f32.xlu1 %v1030_v8  ;;  %v872_v59 = vsub.f32 %v2292_v11, %v771_v9 }
 0x1aa   :  { %v2781_v31 = vpop.eup %1681  ;;  %1695 = vpow2.f32 %v914_v61 }
 0x1ab   :  { %v2783_v15 = vpop.eup %1683  ;;  %v916_v20 = vmul.f32 1.442695, %v871_v48  ;;  %v918_v46 = vmul.f32 1.442695, %v872_v59  ;;  %v1033_v51 = vsel %vm473_vm1, %v2781_v31, 0.0 }
 0x1ac   :  { %1034 = vadd.xlane.f32.xlu0 %v1033_v51  ;;  %v776_v62 = vpop.permute.xlu1 %775  ;;  %v1036_v32 = vsel %vm473_vm1, %v2783_v15, 0.0  ;;  %v781_v63 = vpop.permute.xlu0 %780 }
 0x1ad   :  { %1697 = vpow2.f32 %v916_v20  ;;  %v873_v4 = vsub.f32 %v2302_v14, %v776_v62  ;;  %1037 = vadd.xlane.f32.xlu1 %v1036_v32  ;;  %v874_v11 = vsub.f32 %v2309_v26, %v781_v63 }
 0x1ae   :  { %v2791_v49 = vpop.eup %1685  ;;  %1699 = vpow2.f32 %v918_v46 }
 0x1af   :  { %v2793_v41 = vpop.eup %1687  ;;  %v920_v58 = vmul.f32 1.442695, %v873_v4  ;;  %v922_v18 = vmul.f32 1.442695, %v874_v11  ;;  %v1039_v39 = vsel %vm473_vm1, %v2791_v49, 0.0 }
 0x1b0   :  { %1040 = vadd.xlane.f32.xlu0 %v1039_v39  ;;  %v786_v45 = vpop.permute.xlu1 %785  ;;  %v1042_v29 = vsel %vm473_vm1, %v2793_v41, 0.0  ;;  %v791_v61 = vpop.permute.xlu0 %790 }
 0x1b1   :  { %1701 = vpow2.f32 %v920_v58  ;;  %v875_v14 = vsub.f32 %v2322_v34, %v786_v45  ;;  %1043 = vadd.xlane.f32.xlu1 %v1042_v29  ;;  %v876_v26 = vsub.f32 %v2325_v40, %v791_v61 }
 0x1b2   :  { %v2801_v21 = vpop.eup %1689  ;;  %1703 = vpow2.f32 %v922_v18 }
 0x1b3   :  { %v2803_v0 = vpop.eup %1691  ;;  %v924_v8 = vmul.f32 1.442695, %v875_v14  ;;  %v926_v9 = vmul.f32 1.442695, %v876_v26  ;;  %v1045_v48 = vsel %vm473_vm1, %v2801_v21, 0.0 }
 0x1b4   :  { %1046 = vadd.xlane.f32.xlu0 %v1045_v48  ;;  %v796_v59 = vpop.permute.xlu1 %795  ;;  %v1048_v20 = vsel %vm473_vm1, %v2803_v0, 0.0  ;;  %v801_v46 = vpop.permute.xlu0 %800 }
 0x1b5   :  { %1705 = vpow2.f32 %v924_v8  ;;  %v877_v34 = vsub.f32 %v2334_v44, %v796_v59  ;;  %1049 = vadd.xlane.f32.xlu1 %v1048_v20  ;;  %v878_v40 = vsub.f32 %v2341_v57, %v801_v46 }
 0x1b6   :  { %v2811_v51 = vpop.eup %1693  ;;  %1707 = vpow2.f32 %v926_v9 }
 0x1b7   :  { %v2813_v62 = vpop.eup %1695  ;;  %v928_v32 = vmul.f32 1.442695, %v877_v34  ;;  %v930_v63 = vmul.f32 1.442695, %v878_v40  ;;  %v1051_v4 = vsel %vm473_vm1, %v2811_v51, 0.0 }
 0x1b8   :  { %1052 = vadd.xlane.f32.xlu0 %v1051_v4  ;;  %v806_v11 = vpop.permute.xlu1 %805  ;;  %v1054_v58 = vsel %vm473_vm1, %v2813_v62, 0.0  ;;  %v811_v18 = vpop.permute.xlu0 %810 }
 0x1b9   :  { %1709 = vpow2.f32 %v928_v32  ;;  %v879_v44 = vsub.f32 %v2354_v3, %v806_v11  ;;  %1055 = vadd.xlane.f32.xlu1 %v1054_v58  ;;  %v880_v57 = vsub.f32 %v2357_v10, %v811_v18 }
 0x1ba   :  { %v2821_v39 = vpop.eup %1697  ;;  %1711 = vpow2.f32 %v930_v63 }
 0x1bb   :  { %v2823_v45 = vpop.eup %1699  ;;  %v932_v29 = vmul.f32 1.442695, %v879_v44  ;;  %v934_v61 = vmul.f32 1.442695, %v880_v57  ;;  %v1057_v14 = vsel %vm473_vm1, %v2821_v39, 0.0 }
 0x1bc   :  { %1058 = vadd.xlane.f32.xlu0 %v1057_v14  ;;  %v816_v26 = vpop.permute.xlu1 %815  ;;  %v1060_v8 = vsel %vm473_vm1, %v2823_v45, 0.0  ;;  %v821_v9 = vpop.permute.xlu0 %820 }
 0x1bd   :  { %1713 = vpow2.f32 %v932_v29  ;;  %v881_v3 = vsub.f32 %v2366_v16, %v816_v26  ;;  %1061 = vadd.xlane.f32.xlu1 %v1060_v8  ;;  %v882_v10 = vsub.f32 %v2373_v28, %v821_v9 }
 0x1be   :  { %v2831_v48 = vpop.eup %1701  ;;  %1715 = vpow2.f32 %v934_v61 }
 0x1bf   :  { %v2833_v59 = vpop.eup %1703  ;;  %v936_v20 = vmul.f32 1.442695, %v881_v3  ;;  %v938_v46 = vmul.f32 1.442695, %v882_v10  ;;  %v1063_v34 = vsel %vm473_vm1, %v2831_v48, 0.0 }
 0x1c0   :  { %1064 = vadd.xlane.f32.xlu0 %v1063_v34  ;;  %v826_v40 = vpop.permute.xlu1 %825  ;;  %v1066_v32 = vsel %vm473_vm1, %v2833_v59, 0.0  ;;  %v831_v63 = vpop.permute.xlu0 %830 }
 0x1c1   :  { %1717 = vpow2.f32 %v936_v20  ;;  %v883_v16 = vsub.f32 %v2386_v37, %v826_v40  ;;  %1067 = vadd.xlane.f32.xlu1 %v1066_v32  ;;  %v884_v28 = vsub.f32 %v2389_v47, %v831_v63 }
 0x1c2   :  { %v2841_v4 = vpop.eup %1705  ;;  %1719 = vpow2.f32 %v938_v46 }
 0x1c3   :  { %v2843_v11 = vpop.eup %1707  ;;  %v940_v58 = vmul.f32 1.442695, %v883_v16  ;;  %v942_v18 = vmul.f32 1.442695, %v884_v28  ;;  %v1069_v44 = vsel %vm473_vm1, %v2841_v4, 0.0 }
 0x1c4   :  { %1070 = vadd.xlane.f32.xlu0 %v1069_v44  ;;  %v836_v57 = vpop.permute.xlu1 %835  ;;  %v1072_v29 = vsel %vm473_vm1, %v2843_v11, 0.0  ;;  %v841_v61 = vpop.permute.xlu0 %840 }
 0x1c5   :  { %1721 = vpow2.f32 %v940_v58  ;;  %v885_v37 = vsub.f32 %v2398_v53, %v836_v57  ;;  %1073 = vadd.xlane.f32.xlu1 %v1072_v29  ;;  %v886_v47 = vsub.f32 %v2405_v2, %v841_v61 }
 0x1c6   :  { %v2851_v14 = vpop.eup %1709  ;;  %1723 = vpow2.f32 %v942_v18 }
 0x1c7   :  { %v2853_v26 = vpop.eup %1711  ;;  %v944_v8 = vmul.f32 1.442695, %v885_v37  ;;  %v946_v9 = vmul.f32 1.442695, %v886_v47  ;;  %v1075_v3 = vsel %vm473_vm1, %v2851_v14, 0.0 }
 0x1c8   :  { %1076 = vadd.xlane.f32.xlu0 %v1075_v3  ;;  %v846_v10 = vpop.permute.xlu1 %845  ;;  %v1078_v20 = vsel %vm473_vm1, %v2853_v26, 0.0  ;;  %v851_v46 = vpop.permute.xlu0 %850 }
 0x1c9   :  { %1725 = vpow2.f32 %v944_v8  ;;  %v887_v53 = vsub.f32 %v2412_v12, %v846_v10  ;;  %1079 = vadd.xlane.f32.xlu1 %v1078_v20  ;;  %v888_v2 = vsub.f32 %v2415_v13, %v851_v46  ;;  %v1243_v20 = vld [vmem:[%s3485_s3] sm:$0xff] }
 0x1ca   :  { %v2861_v34 = vpop.eup %1713  ;;  %1727 = vpow2.f32 %v946_v9 }
 0x1cb   :  { %v2863_v40 = vpop.eup %1715  ;;  %v948_v32 = vmul.f32 1.442695, %v887_v53  ;;  %v950_v63 = vmul.f32 1.442695, %v888_v2  ;;  %v1081_v16 = vsel %vm473_vm1, %v2861_v34, 0.0 }
 0x1cc   :  { %1082 = vadd.xlane.f32.xlu0 %v1081_v16  ;;  %v856_v28 = vpop.permute.xlu1 %855  ;;  %v1084_v58 = vsel %vm473_vm1, %v2863_v40, 0.0  ;;  %v1244_v16 = vld [vmem:[%s3485_s3 + $0x8] sm:$0xff] }
 0x1cd   :  { %1729 = vpow2.f32 %v948_v32  ;;  %v889_v12 = vsub.f32 %v2418_v17, %v856_v28  ;;  %1085 = vadd.xlane.f32.xlu1 %v1084_v58  ;;  %v1245_v28 = vld [vmem:[%s3485_s3 + $0x10] sm:$0xff] }
 0x1ce   :  { %v2870_v13 = vpop.eup %1717  ;;  %1731 = vpow2.f32 %v950_v63  ;;  %v1275_v63 = vmul.f32 %v2755_v43, %v1243_v20  ;;  %v1277_v43 = vmul.f32 %v2761_v19, %v1245_v28  ;;  %v1248_v19 = vld [vmem:[%s3485_s3 + $0x28] sm:$0xff]  ;;  %v1249_v20 = vld [vmem:[%s3485_s3 + $0x30] sm:$0xff] }
 0x1cf   :  { %v2872_v18 = vpop.eup %1719  ;;  %v952_v44 = vmul.f32 1.442695, %v889_v12  ;;  %v1087_v57 = vsel %vm473_vm1, %v2870_v13, 0.0 }
 0x1d0   :  { %1088 = vadd.xlane.f32.xlu0 %v1087_v57  ;;  %v1090_v29 = vsel %vm473_vm1, %v2872_v18, 0.0  ;;  %v1307_v57 = vsel %vm473_vm1, %v1275_v63, 0.0  ;;  %v1281_v63 = vmul.f32 %v2783_v15, %v1249_v20  ;;  %v1252_v15 = vld [vmem:[%s3485_s3 + $0x48] sm:$0xff] }
 0x1d1   :  { %1733 = vpow2.f32 %v952_v44  ;;  %1091 = vadd.xlane.f32.xlu1 %v1090_v29  ;;  %v1276_v44 = vmul.f32 %v2763_v23, %v1244_v16  ;;  %v1246_v29 = vld [vmem:[%s3485_s3 + $0x18] sm:$0xff]  ;;  %v1313_v23 = vsel %vm473_vm1, %v1277_v43, 0.0  ;;  %v1251_v16 = vld [vmem:[%s3485_s3 + $0x40] sm:$0xff] }
 0x1d2   :  { %v2878_v61 = vpop.eup %1721 }
 0x1d3   :  { %v2880_v37 = vpop.eup %1723  ;;  %v1093_v17 = vsel %vm473_vm1, %v2878_v61, 0.0 }
 0x1d4   :  { %1094 = vadd.xlane.f32.xlu0 %v1093_v17  ;;  %v1096_v47 = vsel %vm473_vm1, %v2880_v37, 0.0  ;;  %v1247_v17 = vld [vmem:[%s3485_s3 + $0x20] sm:$0xff] }
 0x1d5   :  { %1097 = vadd.xlane.f32.xlu1 %v1096_v47  ;;  %v1310_v47 = vsel %vm473_vm1, %v1276_v44, 0.0  ;;  %v1283_v44 = vmul.f32 %v2793_v41, %v1251_v16  ;;  %v1254_v41 = vld [vmem:[%s3485_s3 + $0x58] sm:$0xff] }
 0x1d6   :  { %v2886_v8 = vpop.eup %1725 }
 0x1d7   :  { %v2888_v9 = vpop.eup %1727  ;;  %v1099_v3 = vsel %vm473_vm1, %v2886_v8, 0.0 }
 0x1d8   :  { %1100 = vadd.xlane.f32.xlu0 %v1099_v3  ;;  %v1102_v10 = vsel %vm473_vm1, %v2888_v9, 0.0  ;;  %v1278_v3 = vmul.f32 %v2771_v50, %v1246_v29  ;;  %v1284_v29 = vmul.f32 %v2801_v21, %v1252_v15  ;;  %v1263_v15 = vld [vmem:[%s3485_s3 + $0xa0] sm:$0xff] }
 0x1d9   :  { %1103 = vadd.xlane.f32.xlu1 %v1102_v10  ;;  %v1279_v10 = vmul.f32 %v2773_v60, %v1247_v17  ;;  %v1250_v60 = vld [vmem:[%s3485_s3 + $0x38] sm:$0xff] }
 0x1da   :  { %v2897_v46 = vpop.eup %1729 }
 0x1db   :  { %v2899_v53 = vpop.eup %1731  ;;  %v1105_v2 = vsel %vm473_vm1, %v2897_v46, 0.0  ;;  %v1319_v50 = vsel %vm473_vm1, %v1279_v10, 0.0 }
 0x1dc   :  { %1106 = vadd.xlane.f32.xlu0 %v1105_v2  ;;  %v1108_v32 = vsel %vm473_vm1, %v2899_v53, 0.0  ;;  %v1316_v2 = vsel %vm473_vm1, %v1278_v3, 0.0  ;;  %v1334_v3 = vsel %vm473_vm1, %v1284_v29, 0.0  ;;  %v1295_v29 = vmul.f32 %v2853_v26, %v1263_v15  ;;  %v1266_v26 = vld [vmem:[%s3485_s3 + $0xb8] sm:$0xff] }
 0x1dd   :  { %1109 = vadd.xlane.f32.xlu1 %v1108_v32  ;;  %v1280_v32 = vmul.f32 %v2781_v31, %v1248_v19  ;;  %v1325_v31 = vsel %vm473_vm1, %v1281_v63, 0.0  ;;  %v1257_v19 = vld [vmem:[%s3485_s3 + $0x70] sm:$0xff]  ;;  %v3586_v15 = vsub.f32 %v2488_v7, %v2504_v30  ;;  %v3591_v7 = vld [vmem:[#allocation6_spill] sm:$0xff] }
 0x1de   :  { %v2912_v58 = vpop.eup %1733  ;;  %v3592_v30 = vld [vmem:[#allocation8_spill] sm:$0xff] }
 0x1df   :  { %v1111_v12 = vsel %vm473_vm1, %v2912_v58, 0.0  ;;  %v1322_v28 = vsel %vm473_vm1, %v1280_v32, 0.0  ;;  %v1289_v32 = vmul.f32 %v2823_v45, %v1257_v19  ;;  %v1260_v45 = vld [vmem:[%s3485_s3 + $0x88] sm:$0xff] }
 0x1e0   :  { %1112 = vadd.xlane.f32.xlu0 %v1111_v12  ;;  %v1282_v12 = vmul.f32 %v2791_v49, %v1250_v60  ;;  %v1331_v49 = vsel %vm473_vm1, %v1283_v44, 0.0 }
 0x1e1   :  { %1308 = vadd.xlane.f32.xlu1 %v1307_v57  ;;  %v1253_v57 = vld [vmem:[%s3485_s3 + $0x50] sm:$0xff] }
 0x1e2   :  { %v1328_v43 = vsel %vm473_vm1, %v1282_v12, 0.0  ;;  %v1285_v17 = vmul.f32 %v2803_v0, %v1253_v57  ;;  %v1256_v0 = vld [vmem:[%s3485_s3 + $0x68] sm:$0xff] }
 0x1e4   :  { %1311 = vadd.xlane.f32.xlu0 %v1310_v47  ;;  %v1255_v47 = vld [vmem:[%s3485_s3 + $0x60] sm:$0xff]  ;;  %v1337_v21 = vsel %vm473_vm1, %v1285_v17, 0.0 }
 0x1e5   :  { %1314 = vadd.xlane.f32.xlu1 %v1313_v23  ;;  %v1286_v23 = vmul.f32 %v2811_v51, %v1254_v41  ;;  %v1287_v10 = vmul.f32 %v2813_v62, %v1255_v47  ;;  %v1258_v62 = vld [vmem:[%s3485_s3 + $0x78] sm:$0xff] }
 0x1e6   :  { %v1290_v60 = vmul.f32 %v2831_v48, %v1258_v62 }
 0x1e7   :  { %v1340_v20 = vsel %vm473_vm1, %v1286_v23, 0.0  ;;  %v1343_v51 = vsel %vm473_vm1, %v1287_v10, 0.0 }
 0x1e8   :  { %1317 = vadd.xlane.f32.xlu0 %v1316_v2  ;;  %v1288_v2 = vmul.f32 %v2821_v39, %v1256_v0  ;;  %v1349_v39 = vsel %vm473_vm1, %v1289_v32, 0.0  ;;  %v1352_v12 = vsel %vm473_vm1, %v1290_v60, 0.0  ;;  %v1269_v0 = vld [vmem:[%s3485_s3 + $0xd0] sm:$0xff]  ;;  %v1272_v60 = vld [vmem:[%s3485_s3 + $0xe8] sm:$0xff] }
 0x1e9   :  { %1320 = vadd.xlane.f32.xlu1 %v1319_v50  ;;  %v1259_v50 = vld [vmem:[%s3485_s3 + $0x80] sm:$0xff] }
 0x1ea   :  { %v1346_v63 = vsel %vm473_vm1, %v1288_v2, 0.0  ;;  %v1291_v16 = vmul.f32 %v2833_v59, %v1259_v50  ;;  %v1262_v59 = vld [vmem:[%s3485_s3 + $0x98] sm:$0xff]  ;;  %v1301_v2 = vmul.f32 %v2880_v37, %v1269_v0  ;;  %v3598_v0 = vld [vmem:[#allocation12_spill] sm:$0xff] }
 0x1ec   :  { %1323 = vadd.xlane.f32.xlu0 %v1322_v28  ;;  %v1261_v28 = vld [vmem:[%s3485_s3 + $0x90] sm:$0xff]  ;;  %v1355_v48 = vsel %vm473_vm1, %v1291_v16, 0.0  ;;  %v1385_v37 = vsel %vm473_vm1, %v1301_v2, 0.0  ;;  %v1304_v16 = vmul.f32 %v2897_v46, %v1272_v60 }
 0x1ed   :  { %1326 = vadd.xlane.f32.xlu1 %v1325_v31  ;;  %v1292_v31 = vmul.f32 %v2841_v4, %v1260_v45  ;;  %v1293_v44 = vmul.f32 %v2843_v11, %v1261_v28  ;;  %v1264_v11 = vld [vmem:[%s3485_s3 + $0xa8] sm:$0xff]  ;;  %v1274_v28 = vld [vmem:[%s3485_s3 + $0xf8] sm:$0xff] }
 0x1ee   :  { %v1296_v41 = vmul.f32 %v2861_v34, %v1264_v11  ;;  %v1394_v46 = vsel %vm473_vm1, %v1304_v16, 0.0 }
 0x1ef   :  { %v1358_v57 = vsel %vm473_vm1, %v1292_v31, 0.0  ;;  %v1361_v4 = vsel %vm473_vm1, %v1293_v44, 0.0  ;;  %v3583_v44 = vsub.f32 %v2446_v36, %v2461_v52  ;;  %v648_v36 = vmul.f32 1.442695, %v3586_v15  ;;  %v3610_v15 = vld [vmem:[#allocation20_spill] sm:$0xff] }
 0x1f0   :  { %1329 = vadd.xlane.f32.xlu0 %v1328_v43  ;;  %v1294_v43 = vmul.f32 %v2851_v14, %v1262_v59  ;;  %v1367_v14 = vsel %vm473_vm1, %v1295_v29, 0.0  ;;  %v1370_v23 = vsel %vm473_vm1, %v1296_v41, 0.0 }
 0x1f1   :  { %1332 = vadd.xlane.f32.xlu1 %v1331_v49  ;;  %v1265_v49 = vld [vmem:[%s3485_s3 + $0xb0] sm:$0xff]  ;;  %v642_v59 = vmul.f32 1.442695, %v3583_v44  ;;  %v3606_v44 = vld [vmem:[#allocation19_spill] sm:$0xff] }
 0x1f2   :  { %v1364_v17 = vsel %vm473_vm1, %v1294_v43, 0.0  ;;  %v1297_v47 = vmul.f32 %v2863_v40, %v1265_v49  ;;  %v1268_v40 = vld [vmem:[%s3485_s3 + $0xc8] sm:$0xff]  ;;  %v3593_v49 = vsub.f32 %v3591_v7, %v3592_v30 }
 0x1f3   :  { %v3612_v30 = vld [vmem:[#allocation23_spill] sm:$0xff] }
 0x1f4   :  { %1335 = vadd.xlane.f32.xlu0 %v1334_v3  ;;  %v1267_v3 = vld [vmem:[%s3485_s3 + $0xc0] sm:$0xff]  ;;  %v1373_v34 = vsel %vm473_vm1, %v1297_v47, 0.0 }
 0x1f5   :  { %1338 = vadd.xlane.f32.xlu1 %v1337_v21  ;;  %v1298_v21 = vmul.f32 %v2870_v13, %v1266_v26  ;;  %v1299_v10 = vmul.f32 %v2872_v18, %v1267_v3  ;;  %v1270_v18 = vld [vmem:[%s3485_s3 + $0xd8] sm:$0xff]  ;;  %v3594_v26 = vld [vmem:[#allocation11_spill] sm:$0xff] }
 0x1f6   :  { %v1302_v62 = vmul.f32 %v2886_v8, %v1270_v18  ;;  %v3595_v3 = vld [vmem:[#allocation13_spill] sm:$0xff] }
 0x1f7   :  { %v1376_v19 = vsel %vm473_vm1, %v1298_v21, 0.0  ;;  %v1379_v13 = vsel %vm473_vm1, %v1299_v10, 0.0  ;;  %v957_v18 = vld [vmem:[#allocation3 + $0x18] sm:$0xff] }
 0x1f8   :  { %1341 = vadd.xlane.f32.xlu0 %v1340_v20  ;;  %v1300_v20 = vmul.f32 %v2878_v61, %v1268_v40  ;;  %v3579_v61 = vsub.f32 %v2426_v22, %v2429_v25  ;;  %v1388_v8 = vsel %vm473_vm1, %v1302_v62, 0.0  ;;  %v3580_v22 = vsub.f32 %v2433_v27, %v2444_v35  ;;  %v3597_v40 = vld [vmem:[#allocation10_spill] sm:$0xff] }
 0x1f9   :  { %1344 = vadd.xlane.f32.xlu1 %v1343_v51  ;;  %v1271_v51 = vld [vmem:[%s3485_s3 + $0xe0] sm:$0xff]  ;;  %v3582_v27 = vsub.f32 %v2448_v38, %v2464_v54  ;;  %v3585_v38 = vsub.f32 %v2466_v55, %v2481_v1 }
 0x1fa   :  { %v1382_v32 = vsel %vm473_vm1, %v1300_v20, 0.0  ;;  %v634_v50 = vmul.f32 1.442695, %v3579_v61  ;;  %v638_v25 = vmul.f32 1.442695, %v3580_v22  ;;  %v958_v61 = vld [vmem:[#allocation3 + $0x20] sm:$0xff] }
 0x1fb   :  { %v640_v35 = vmul.f32 1.442695, %v3582_v27  ;;  %v646_v54 = vmul.f32 1.442695, %v3585_v38  ;;  %v3603_v22 = vld [vmem:[#allocation14_spill] sm:$0xff] }
 0x1fc   :  { %1347 = vadd.xlane.f32.xlu0 %v1346_v63  ;;  %v1303_v63 = vmul.f32 %v2888_v9, %v1271_v51  ;;  %1735 = vpow2.f32 %v634_v50 }
 0x1fd   :  { %1350 = vadd.xlane.f32.xlu1 %v1349_v39  ;;  %v1273_v39 = vld [vmem:[%s3485_s3 + $0xf0] sm:$0xff]  ;;  %1737 = vpow2.f32 %v638_v25 }
 0x1fe   :  { %v1391_v9 = vsel %vm473_vm1, %v1303_v63, 0.0  ;;  %v1305_v45 = vmul.f32 %v2899_v53, %v1273_v39  ;;  %v3601_v63 = vld [vmem:[#allocation17_spill] sm:$0xff]  ;;  %v3604_v25 = vld [vmem:[#allocation16_spill] sm:$0xff] }
 0x200   :  { %1353 = vadd.xlane.f32.xlu0 %v1352_v12  ;;  %v3581_v12 = vsub.f32 %v2431_v42, %v2441_v33  ;;  %v1397_v53 = vsel %vm473_vm1, %v1305_v45, 0.0  ;;  %v3584_v33 = vsub.f32 %v2468_v56, %v2484_v5  ;;  %v954_v56 = vld [vmem:[#allocation3] sm:$0xff]  ;;  %v3588_v5 = vld [vmem:[#allocation7_spill] sm:$0xff] }
 0x201   :  { %1356 = vadd.xlane.f32.xlu1 %v1355_v48  ;;  %v1306_v48 = vmul.f32 %v2912_v58, %v1274_v28 }
 0x202   :  { %v636_v31 = vmul.f32 1.442695, %v3581_v12  ;;  %v644_v58 = vmul.f32 1.442695, %v3584_v33 }
 0x203   :  { %v1400_v42 = vsel %vm473_vm1, %v1306_v48, 0.0 }
 0x204   :  { %1359 = vadd.xlane.f32.xlu0 %v1358_v57  ;;  %1739 = vpow2.f32 %v636_v31  ;;  %v3587_v57 = vsub.f32 %v2486_v6, %v2501_v24  ;;  %v955_v24 = vld [vmem:[#allocation3 + $0x8] sm:$0xff] }
 0x205   :  { %1362 = vadd.xlane.f32.xlu1 %v1361_v4  ;;  %1741 = vpow2.f32 %v640_v35  ;;  %v3589_v4 = vld [vmem:[#allocation9_spill] sm:$0xff]  ;;  %v959_v31 = vld [vmem:[#allocation3 + $0x28] sm:$0xff]  ;;  %v960_v35 = vld [vmem:[#allocation3 + $0x30] sm:$0xff] }
 0x206   :  { %1743 = vpow2.f32 %v642_v59  ;;  %v650_v43 = vmul.f32 1.442695, %v3587_v57  ;;  %v3590_v29 = vsub.f32 %v3588_v5, %v3589_v4  ;;  %v3607_v59 = vld [vmem:[#allocation21_spill] sm:$0xff] }
 0x207   :  { %1745 = vpow2.f32 %v644_v58  ;;  %v961_v5 = vld [vmem:[#allocation3 + $0x38] sm:$0xff] }
 0x208   :  { %1365 = vadd.xlane.f32.xlu0 %v1364_v17  ;;  %1747 = vpow2.f32 %v646_v54  ;;  %v652_v11 = vmul.f32 1.442695, %v3590_v29  ;;  %v654_v17 = vmul.f32 1.442695, %v3593_v49  ;;  %v3609_v54 = vld [vmem:[#allocation18_spill] sm:$0xff]  ;;  %v3613_v49 = vld [vmem:[#allocation25_spill] sm:$0xff] }
 0x209   :  { %1368 = vadd.xlane.f32.xlu1 %v1367_v14  ;;  %v3090_v52 = vpop.eup %1735  ;;  %1749 = vpow2.f32 %v648_v36  ;;  %v956_v14 = vld [vmem:[#allocation3 + $0x10] sm:$0xff]  ;;  %v3611_v36 = vsub.f32 %v3609_v54, %v3610_v15 }
 0x20a   :  { %v986_v55 = vmul.f32 %v3090_v52, %v954_v56  ;;  %v3099_v1 = vpop.eup %1737  ;;  %1751 = vpow2.f32 %v650_v43 }
 0x20b   :  { %1753 = vpow2.f32 %v652_v11  ;;  %v666_v57 = vmul.f32 1.442695, %v3611_v36 }
 0x20c   :  { %1371 = vadd.xlane.f32.xlu0 %v1370_v23  ;;  %v3596_v23 = vsub.f32 %v3594_v26, %v3595_v3  ;;  %1755 = vpow2.f32 %v654_v17  ;;  %v3614_v17 = vsub.f32 %v3612_v30, %v3613_v49  ;;  %v3616_v26 = vld [vmem:[#allocation24_spill] sm:$0xff]  ;;  %v3631_v30 = vld [vmem:[#allocation37_spill] sm:$0xff] }
 0x20d   :  { %1374 = vadd.xlane.f32.xlu1 %v1373_v34  ;;  %v988_v34 = vmul.f32 %v3099_v1, %v956_v14 }
 0x20e   :  { %v656_v21 = vmul.f32 1.442695, %v3596_v23 }
 0x210   :  { %1377 = vadd.xlane.f32.xlu0 %v1376_v19  ;;  %v3599_v19 = vsub.f32 %v3597_v40, %v3598_v0  ;;  %1757 = vpow2.f32 %v656_v21  ;;  %v963_v40 = vld [vmem:[#allocation3 + $0x48] sm:$0xff] }
 0x211   :  { %1380 = vadd.xlane.f32.xlu1 %v1379_v13  ;;  %v3104_v47 = vpop.eup %1739 }
 0x212   :  { %v3111_v10 = vpop.eup %1741  ;;  %v658_v20 = vmul.f32 1.442695, %v3599_v19  ;;  %v987_v13 = vmul.f32 %v3104_v47, %v955_v24  ;;  %v3615_v24 = vld [vmem:[#allocation22_spill] sm:$0xff] }
 0x213   :  { %v3117_v51 = vpop.eup %1743  ;;  %v3617_v3 = vsub.f32 %v3615_v24, %v3616_v26  ;;  %v3633_v24 = vld [vmem:[#allocation34_spill] sm:$0xff]  ;;  %v3634_v26 = vld [vmem:[#allocation36_spill] sm:$0xff] }
 0x214   :  { %1383 = vadd.xlane.f32.xlu0 %v1382_v32  ;;  %v3124_v16 = vpop.eup %1745  ;;  %1759 = vpow2.f32 %v658_v20  ;;  %v990_v28 = vmul.f32 %v3117_v51, %v958_v61 }
 0x215   :  { %1386 = vadd.xlane.f32.xlu1 %v1385_v37  ;;  %v3600_v37 = vld [vmem:[#allocation15_spill] sm:$0xff]  ;;  %v991_v58 = vmul.f32 %v3124_v16, %v959_v31  ;;  %v670_v23 = vmul.f32 1.442695, %v3617_v3  ;;  %v966_v31 = vld [vmem:[#allocation3 + $0x60] sm:$0xff]  ;;  %v3635_v3 = vsub.f32 %v3633_v24, %v3634_v26  ;;  %v3649_v26 = vld [vmem:[#allocation49_spill] sm:$0xff] }
 0x216   :  { %v3602_v60 = vsub.f32 %v3600_v37, %v3601_v63  ;;  %v3621_v63 = vld [vmem:[#allocation26_spill] sm:$0xff]  ;;  %v3648_v24 = vld [vmem:[#allocation47_spill] sm:$0xff] }
 0x218   :  { %1389 = vadd.xlane.f32.xlu0 %v1388_v8  ;;  %v660_v39 = vmul.f32 1.442695, %v3602_v60  ;;  %v989_v8 = vmul.f32 %v3111_v10, %v957_v18  ;;  %v3618_v18 = vld [vmem:[#allocation27_spill] sm:$0xff]  ;;  %v3622_v60 = vld [vmem:[#allocation28_spill] sm:$0xff] }
 0x219   :  { %1392 = vadd.xlane.f32.xlu1 %v1391_v9  ;;  %v3605_v9 = vsub.f32 %v3603_v22, %v3604_v25 }
 0x21a   :  { %1761 = vpow2.f32 %v660_v39  ;;  %v3623_v39 = vsub.f32 %v3621_v63, %v3622_v60 }
 0x21b   :  { %v662_v45 = vmul.f32 1.442695, %v3605_v9  ;;  %v965_v9 = vld [vmem:[#allocation3 + $0x58] sm:$0xff] }
 0x21c   :  { %1395 = vadd.xlane.f32.xlu0 %v1394_v46  ;;  %v3131_v46 = vpop.eup %1747 }
 0x21d   :  { %1398 = vadd.xlane.f32.xlu1 %v1397_v53  ;;  %v3138_v38 = vpop.eup %1749  ;;  %1763 = vpow2.f32 %v662_v45  ;;  %v992_v43 = vmul.f32 %v3131_v46, %v960_v35  ;;  %v3625_v35 = vld [vmem:[#allocation33_spill] sm:$0xff] }
 0x21e   :  { %v3145_v4 = vpop.eup %1751  ;;  %v993_v14 = vmul.f32 %v3138_v38, %v961_v5 }
 0x220   :  { %1401 = vadd.xlane.f32.xlu0 %v1400_v42  ;;  %v3608_v42 = vsub.f32 %v3606_v44, %v3607_v59 }
 0x222   :  { %v664_v33 = vmul.f32 1.442695, %v3608_v42 }
 0x224   :  { %1765 = vpow2.f32 %v664_v33  ;;  %v3627_v33 = vld [vmem:[#allocation30_spill] sm:$0xff] }
 0x225   :  { %1767 = vpow2.f32 %v666_v57 }
 0x229   :  { %v1020_v41 = vpop.xlane.xlu0 %1019 }
 0x22a   :  { %v1114_v6 = vadd.f32 %v1020_v41, %v986_v55  ;;  %v962_v55 = vld [vmem:[#allocation3 + $0x40] sm:$0xff]  ;;  %v668_v41 = vmul.f32 1.442695, %v3614_v17 }
 0x22b   :  { %v994_v21 = vmul.f32 %v3145_v4, %v962_v55 }
 0x22c   :  { %1147 = vst.msk [vmem:[#allocation3] sm:$0xff] %vm22_vm0, %v1114_v6  ;;  %v3152_v6 = vpop.eup %1753  ;;  %1769 = vpow2.f32 %v668_v41 }
 0x22d   :  { %v1026_v2 = vpop.xlane.xlu0 %1025  ;;  %v3159_v0 = vpop.eup %1755  ;;  %1771 = vpow2.f32 %v670_v23  ;;  %v682_v23 = vmul.f32 1.442695, %v3635_v3  ;;  %v3650_v3 = vsub.f32 %v3648_v24, %v3649_v26 }
 0x22e   :  { %v1023_v32 = vpop.xlane.xlu1 %1022  ;;  %v1116_v62 = vadd.f32 %v1026_v2, %v988_v34  ;;  %v3166_v37 = vpop.eup %1757 }
 0x22f   :  { %v1115_v50 = vadd.f32 %v1023_v32, %v987_v13  ;;  %v964_v13 = vld [vmem:[#allocation3 + $0x50] sm:$0xff]  ;;  %v3619_v32 = vld [vmem:[#allocation29_spill] sm:$0xff]  ;;  %v3173_v45 = vpop.eup %1759  ;;  %v997_v59 = vmul.f32 %v3166_v37, %v965_v9 }
 0x230   :  { %1149 = vst.msk [vmem:[#allocation3 + $0x10] sm:$0xff] %vm22_vm0, %v1116_v62  ;;  %v3620_v62 = vsub.f32 %v3618_v18, %v3619_v32  ;;  %v996_v22 = vmul.f32 %v3159_v0, %v964_v13  ;;  %v3180_v42 = vpop.eup %1761  ;;  %v998_v36 = vmul.f32 %v3173_v45, %v966_v31  ;;  %v3636_v32 = vld [vmem:[#allocation39_spill] sm:$0xff] }
 0x231   :  { %1148 = vst.msk [vmem:[#allocation3 + $0x8] sm:$0xff] %vm22_vm0, %v1115_v50  ;;  %v1029_v12 = vpop.xlane.xlu0 %1028  ;;  %v995_v50 = vmul.f32 %v3152_v6, %v963_v40  ;;  %v969_v40 = vld [vmem:[#allocation3 + $0x78] sm:$0xff] }
 0x232   :  { %v1032_v48 = vpop.xlane.xlu1 %1031  ;;  %v1117_v27 = vadd.f32 %v1029_v12, %v989_v8  ;;  %v672_v61 = vmul.f32 1.442695, %v3620_v62  ;;  %v674_v8 = vmul.f32 1.442695, %v3623_v39  ;;  %v3637_v62 = vld [vmem:[#allocation41_spill] sm:$0xff]  ;;  %v3639_v39 = vld [vmem:[#allocation38_spill] sm:$0xff] }
 0x233   :  { %v1118_v53 = vadd.f32 %v1032_v48, %v990_v28 }
 0x234   :  { %1150 = vst.msk [vmem:[#allocation3 + $0x18] sm:$0xff] %vm22_vm0, %v1117_v27  ;;  %1773 = vpow2.f32 %v672_v61  ;;  %v3624_v27 = vld [vmem:[#allocation31_spill] sm:$0xff]  ;;  %v3638_v61 = vsub.f32 %v3636_v32, %v3637_v62 }
 0x235   :  { %1151 = vst.msk [vmem:[#allocation3 + $0x20] sm:$0xff] %vm22_vm0, %v1118_v53  ;;  %v1035_v56 = vpop.xlane.xlu0 %1034  ;;  %v3626_v53 = vsub.f32 %v3624_v27, %v3625_v35  ;;  %1775 = vpow2.f32 %v674_v8  ;;  %v3640_v8 = vld [vmem:[#allocation40_spill] sm:$0xff]  ;;  %v975_v62 = vld [vmem:[#allocation3 + $0xa8] sm:$0xff] }
 0x236   :  { %v1038_v29 = vpop.xlane.xlu1 %1037  ;;  %v1119_v11 = vadd.f32 %v1035_v56, %v991_v58  ;;  %v3628_v58 = vld [vmem:[#allocation32_spill] sm:$0xff]  ;;  %v3187_v56 = vpop.eup %1763 }
 0x237   :  { %v1120_v7 = vadd.f32 %v1038_v29, %v992_v43  ;;  %v676_v44 = vmul.f32 1.442695, %v3626_v53  ;;  %v3629_v54 = vsub.f32 %v3627_v33, %v3628_v58  ;;  %v967_v43 = vld [vmem:[#allocation3 + $0x68] sm:$0xff]  ;;  %v972_v35 = vld [vmem:[#allocation3 + $0x90] sm:$0xff] }
 0x238   :  { %1152 = vst.msk [vmem:[#allocation3 + $0x28] sm:$0xff] %vm22_vm0, %v1119_v11  ;;  %v968_v11 = vld [vmem:[#allocation3 + $0x70] sm:$0xff]  ;;  %v999_v41 = vmul.f32 %v3180_v42, %v967_v43 }
 0x239   :  { %1153 = vst.msk [vmem:[#allocation3 + $0x30] sm:$0xff] %vm22_vm0, %v1120_v7  ;;  %v1041_v34 = vpop.xlane.xlu0 %1040  ;;  %v678_v15 = vmul.f32 1.442695, %v3629_v54  ;;  %1777 = vpow2.f32 %v676_v44  ;;  %v3630_v7 = vld [vmem:[#allocation35_spill] sm:$0xff] }
 0x23a   :  { %v1044_v19 = vpop.xlane.xlu1 %1043  ;;  %v1121_v20 = vadd.f32 %v1041_v34, %v993_v14  ;;  %v3632_v49 = vsub.f32 %v3630_v7, %v3631_v30  ;;  %v3194_v14 = vpop.eup %1765  ;;  %v3642_v44 = vld [vmem:[#allocation43_spill] sm:$0xff] }
 0x23b   :  { %v1122_v2 = vadd.f32 %v1044_v19, %v994_v21  ;;  %1779 = vpow2.f32 %v678_v15  ;;  %v1000_v21 = vmul.f32 %v3187_v56, %v968_v11  ;;  %v3201_v19 = vpop.eup %1767  ;;  %v1001_v63 = vmul.f32 %v3194_v14, %v969_v40  ;;  %v3651_v40 = vld [vmem:[#allocation46_spill] sm:$0xff] }
 0x23c   :  { %1154 = vst.msk [vmem:[#allocation3 + $0x38] sm:$0xff] %vm22_vm0, %v1121_v20  ;;  %v680_v17 = vmul.f32 1.442695, %v3632_v49  ;;  %v3208_v60 = vpop.eup %1769 }
 0x23d   :  { %1155 = vst.msk [vmem:[#allocation3 + $0x40] sm:$0xff] %vm22_vm0, %v1122_v2  ;;  %v1047_v25 = vpop.xlane.xlu0 %1046  ;;  %v970_v2 = vld [vmem:[#allocation3 + $0x80] sm:$0xff]  ;;  %v3215_v31 = vpop.eup %1771 }
 0x23e   :  { %v1050_v28 = vpop.xlane.xlu1 %1049  ;;  %v1123_v12 = vadd.f32 %v1047_v25, %v995_v50  ;;  %1781 = vpow2.f32 %v680_v17  ;;  %v684_v50 = vmul.f32 1.442695, %v3638_v61  ;;  %v1002_v9 = vmul.f32 %v3201_v19, %v970_v2  ;;  %v974_v17 = vld [vmem:[#allocation3 + $0xa0] sm:$0xff] }
 0x23f   :  { %v1124_v48 = vadd.f32 %v1050_v28, %v996_v22  ;;  %1783 = vpow2.f32 %v682_v23  ;;  %v3641_v22 = vsub.f32 %v3639_v39, %v3640_v8  ;;  %v692_v23 = vmul.f32 1.442695, %v3650_v3  ;;  %v976_v39 = vld [vmem:[#allocation3 + $0xb0] sm:$0xff] }
 0x240   :  { %1156 = vst.msk [vmem:[#allocation3 + $0x48] sm:$0xff] %vm22_vm0, %v1123_v12  ;;  %v971_v12 = vld [vmem:[#allocation3 + $0x88] sm:$0xff]  ;;  %1785 = vpow2.f32 %v684_v50 }
 0x241   :  { %1157 = vst.msk [vmem:[#allocation3 + $0x50] sm:$0xff] %vm22_vm0, %v1124_v48  ;;  %v1053_v57 = vpop.xlane.xlu0 %1052  ;;  %v686_v25 = vmul.f32 1.442695, %v3641_v22  ;;  %v1003_v54 = vmul.f32 %v3208_v60, %v971_v12  ;;  %v3222_v15 = vpop.eup %1773  ;;  %v3654_v22 = vld [vmem:[#allocation50_spill] sm:$0xff] }
 0x242   :  { %v1056_v5 = vpop.xlane.xlu1 %1055  ;;  %v1125_v29 = vadd.f32 %v1053_v57, %v997_v59  ;;  %v3643_v59 = vld [vmem:[#allocation45_spill] sm:$0xff]  ;;  %v3646_v57 = vld [vmem:[#allocation44_spill] sm:$0xff]  ;;  %v3229_v7 = vpop.eup %1775 }
 0x243   :  { %v1126_v55 = vadd.f32 %v1056_v5, %v998_v36  ;;  %v3644_v33 = vsub.f32 %v3642_v44, %v3643_v59  ;;  %1787 = vpow2.f32 %v686_v25  ;;  %v3645_v36 = vld [vmem:[#allocation42_spill] sm:$0xff]  ;;  %v3655_v25 = vld [vmem:[#allocation51_spill] sm:$0xff] }
 0x244   :  { %1158 = vst.msk [vmem:[#allocation3 + $0x58] sm:$0xff] %vm22_vm0, %v1125_v29  ;;  %v3647_v43 = vsub.f32 %v3645_v36, %v3646_v57  ;;  %v1004_v29 = vmul.f32 %v3215_v31, %v972_v35 }
 0x245   :  { %1159 = vst.msk [vmem:[#allocation3 + $0x60] sm:$0xff] %vm22_vm0, %v1126_v55  ;;  %v1059_v34 = vpop.xlane.xlu0 %1058  ;;  %v688_v58 = vmul.f32 1.442695, %v3644_v33  ;;  %v973_v55 = vld [vmem:[#allocation3 + $0x98] sm:$0xff] }
 0x246   :  { %v1062_v20 = vpop.xlane.xlu1 %1061  ;;  %v1127_v13 = vadd.f32 %v1059_v34, %v999_v41  ;;  %v690_v5 = vmul.f32 1.442695, %v3647_v43  ;;  %v3236_v34 = vpop.eup %1777 }
 0x247   :  { %v1128_v18 = vadd.f32 %v1062_v20, %v1000_v21  ;;  %1789 = vpow2.f32 %v688_v58  ;;  %v1005_v21 = vmul.f32 %v3222_v15, %v973_v55  ;;  %v3652_v20 = vld [vmem:[#allocation48_spill] sm:$0xff]  ;;  %v1007_v12 = vmul.f32 %v3236_v34, %v975_v62  ;;  %v978_v58 = vld [vmem:[#allocation3 + $0xc0] sm:$0xff] }
 0x248   :  { %1160 = vst.msk [vmem:[#allocation3 + $0x68] sm:$0xff] %vm22_vm0, %v1127_v13  ;;  %1791 = vpow2.f32 %v690_v5  ;;  %v3653_v13 = vsub.f32 %v3651_v40, %v3652_v20  ;;  %v3243_v61 = vpop.eup %1779 }
 0x249   :  { %1161 = vst.msk [vmem:[#allocation3 + $0x70] sm:$0xff] %vm22_vm0, %v1128_v18  ;;  %v1065_v28 = vpop.xlane.xlu0 %1064  ;;  %v1006_v18 = vmul.f32 %v3229_v7, %v974_v17  ;;  %1793 = vpow2.f32 %v692_v23  ;;  %v981_v23 = vld [vmem:[#allocation3 + $0xd8] sm:$0xff] }
 0x24a   :  { %v1068_v48 = vpop.xlane.xlu1 %1067  ;;  %v1129_v27 = vadd.f32 %v1065_v28, %v1001_v63  ;;  %v694_v2 = vmul.f32 1.442695, %v3653_v13  ;;  %v982_v13 = vld [vmem:[#allocation3 + $0xe0] sm:$0xff] }
 0x24b   :  { %v1130_v53 = vadd.f32 %v1068_v48, %v1002_v9  ;;  %v3656_v9 = vsub.f32 %v3654_v22, %v3655_v25  ;;  %v3250_v48 = vpop.eup %1781  ;;  %v984_v25 = vld [vmem:[#allocation3 + $0xf0] sm:$0xff] }
 0x24c   :  { %1162 = vst.msk [vmem:[#allocation3 + $0x78] sm:$0xff] %vm22_vm0, %v1129_v27  ;;  %1795 = vpow2.f32 %v694_v2  ;;  %v1008_v27 = vmul.f32 %v3243_v61, %v976_v39  ;;  %v3254_v44 = vpop.eup %1783 }
 0x24d   :  { %1163 = vst.msk [vmem:[#allocation3 + $0x80] sm:$0xff] %vm22_vm0, %v1130_v53  ;;  %v1071_v11 = vpop.xlane.xlu0 %1070  ;;  %v696_v28 = vmul.f32 1.442695, %v3656_v9  ;;  %v977_v53 = vld [vmem:[#allocation3 + $0xb8] sm:$0xff]  ;;  %v3258_v57 = vpop.eup %1785  ;;  %v1010_v43 = vmul.f32 %v3254_v44, %v978_v58 }
 0x24e   :  { %v1074_v30 = vpop.xlane.xlu1 %1073  ;;  %v1131_v49 = vadd.f32 %v1071_v11, %v1003_v54  ;;  %v1009_v36 = vmul.f32 %v3250_v48, %v977_v53 }
 0x24f   :  { %v1132_v41 = vadd.f32 %v1074_v30, %v1004_v29  ;;  %1797 = vpow2.f32 %v696_v28  ;;  %v979_v29 = vld [vmem:[#allocation3 + $0xc8] sm:$0xff]  ;;  %v1534_v28 = vld [vmem:[#allocation3] sm:$0xff] }
 0x250   :  { %1164 = vst.msk [vmem:[#allocation3 + $0x88] sm:$0xff] %vm22_vm0, %v1131_v49  ;;  %v3262_v11 = vpop.eup %1787  ;;  %v980_v49 = vld [vmem:[#allocation3 + $0xd0] sm:$0xff]  ;;  %1799 = vrcp.f32 %v1534_v28 }
 0x251   :  { %1165 = vst.msk [vmem:[#allocation3 + $0x90] sm:$0xff] %vm22_vm0, %v1132_v41  ;;  %v1077_v32 = vpop.xlane.xlu0 %1076  ;;  %v1011_v41 = vmul.f32 %v3258_v57, %v979_v29  ;;  %v1012_v26 = vmul.f32 %v3262_v11, %v980_v49  ;;  %v1180_v49 = vld [vmem:[#allocation4 + $0x8] sm:$0xff] }
 0x252   :  { %v1080_v50 = vpop.xlane.xlu1 %1079  ;;  %v1133_v63 = vadd.f32 %v1077_v32, %v1005_v21 }
 0x253   :  { %v1134_v8 = vadd.f32 %v1080_v50, %v1006_v18 }
 0x254   :  { %1166 = vst.msk [vmem:[#allocation3 + $0x98] sm:$0xff] %vm22_vm0, %v1133_v63  ;;  %v3266_v24 = vpop.eup %1789  ;;  %v983_v63 = vld [vmem:[#allocation3 + $0xe8] sm:$0xff] }
 0x255   :  { %1167 = vst.msk [vmem:[#allocation3 + $0xa0] sm:$0xff] %vm22_vm0, %v1134_v8  ;;  %v1083_v35 = vpop.xlane.xlu0 %1082  ;;  %v3270_v21 = vpop.eup %1791  ;;  %v1013_v18 = vmul.f32 %v3266_v24, %v981_v23 }
 0x256   :  { %v1086_v59 = vpop.xlane.xlu1 %1085  ;;  %v1135_v33 = vadd.f32 %v1083_v35, %v1007_v12  ;;  %v3274_v32 = vpop.eup %1793  ;;  %v1014_v62 = vmul.f32 %v3270_v21, %v982_v13 }
 0x257   :  { %v1136_v54 = vadd.f32 %v1086_v59, %v1008_v27  ;;  %v1015_v12 = vmul.f32 %v3274_v32, %v983_v63  ;;  %v985_v59 = vld [vmem:[#allocation3 + $0xf8] sm:$0xff]  ;;  %v1539_v63 = vld [vmem:[#allocation3 + $0x28] sm:$0xff] }
 0x258   :  { %1168 = vst.msk [vmem:[#allocation3 + $0xa8] sm:$0xff] %vm22_vm0, %v1135_v33 }
 0x259   :  { %1169 = vst.msk [vmem:[#allocation3 + $0xb0] sm:$0xff] %vm22_vm0, %v1136_v54  ;;  %v1089_v5 = vpop.xlane.xlu0 %1088  ;;  %v3278_v39 = vpop.eup %1795  ;;  %v1179_v54 = vld [vmem:[#allocation4] sm:$0xff] }
 0x25a   :  { %v1092_v55 = vpop.xlane.xlu1 %1091  ;;  %v1137_v30 = vadd.f32 %v1089_v5, %v1009_v36  ;;  %v1016_v35 = vmul.f32 %v3278_v39, %v984_v25  ;;  %v1535_v36 = vld [vmem:[#allocation3 + $0x8] sm:$0xff]  ;;  %v1536_v5 = vld [vmem:[#allocation3 + $0x10] sm:$0xff] }
 0x25b   :  { %v1138_v17 = vadd.f32 %v1092_v55, %v1010_v43  ;;  %v1211_v55 = vmul.f32 %v3090_v52, %v1179_v54  ;;  %1801 = vrcp.f32 %v1535_v36  ;;  %v1182_v52 = vld [vmem:[#allocation4 + $0x18] sm:$0xff] }
 0x25c   :  { %1170 = vst.msk [vmem:[#allocation3 + $0xb8] sm:$0xff] %vm22_vm0, %v1137_v30  ;;  %v3282_v27 = vpop.eup %1797  ;;  %1803 = vrcp.f32 %v1536_v5  ;;  %v1214_v25 = vmul.f32 %v3111_v10, %v1182_v52  ;;  %v1186_v5 = vld [vmem:[#allocation4 + $0x38] sm:$0xff]  ;;  %v1188_v52 = vld [vmem:[#allocation4 + $0x48] sm:$0xff] }
 0x25d   :  { %1171 = vst.msk [vmem:[#allocation3 + $0xc0] sm:$0xff] %vm22_vm0, %v1138_v17  ;;  %v1095_v3 = vpop.xlane.xlu0 %1094  ;;  %v1017_v29 = vmul.f32 %v3282_v27, %v985_v59 }
 0x25e   :  { %v1098_v40 = vpop.xlane.xlu1 %1097  ;;  %v1139_v20 = vadd.f32 %v1095_v3, %v1011_v41  ;;  %v1537_v3 = vld [vmem:[#allocation3 + $0x18] sm:$0xff] }
 0x25f   :  { %v1140_v2 = vadd.f32 %v1098_v40, %v1012_v26  ;;  %v1181_v26 = vld [vmem:[#allocation4 + $0x10] sm:$0xff]  ;;  %v1538_v40 = vld [vmem:[#allocation3 + $0x20] sm:$0xff]  ;;  %1805 = vrcp.f32 %v1537_v3 }
 0x260   :  { %1172 = vst.msk [vmem:[#allocation3 + $0xc8] sm:$0xff] %vm22_vm0, %v1139_v20  ;;  %v1212_v20 = vmul.f32 %v3104_v47, %v1180_v49  ;;  %v1213_v13 = vmul.f32 %v3099_v1, %v1181_v26  ;;  %1807 = vrcp.f32 %v1538_v40  ;;  %v1184_v1 = vld [vmem:[#allocation4 + $0x28] sm:$0xff]  ;;  %v1544_v3 = vld [vmem:[#allocation3 + $0x50] sm:$0xff]  ;;  %v1218_v40 = vmul.f32 %v3138_v38, %v1186_v5 }
 0x261   :  { %1173 = vst.msk [vmem:[#allocation3 + $0xd0] sm:$0xff] %vm22_vm0, %v1140_v2  ;;  %v1101_v50 = vpop.xlane.xlu0 %1100  ;;  %1809 = vrcp.f32 %v1539_v63  ;;  %v1216_v10 = vmul.f32 %v3124_v16, %v1184_v1  ;;  %v1220_v1 = vmul.f32 %v3152_v6, %v1188_v52 }
 0x262   :  { %v1104_v8 = vpop.xlane.xlu1 %1103  ;;  %v1141_v22 = vadd.f32 %v1101_v50, %v1013_v18  ;;  %v1183_v50 = vld [vmem:[#allocation4 + $0x20] sm:$0xff] }
 0x263   :  { %v1142_v9 = vadd.f32 %v1104_v8, %v1014_v62  ;;  %v1215_v47 = vmul.f32 %v3117_v51, %v1183_v50  ;;  %v1189_v50 = vld [vmem:[#allocation4 + $0x50] sm:$0xff] }
 0x264   :  { %1174 = vst.msk [vmem:[#allocation3 + $0xd8] sm:$0xff] %vm22_vm0, %v1141_v22  ;;  %v1540_v22 = vld [vmem:[#allocation3 + $0x30] sm:$0xff] }
 0x265   :  { %1175 = vst.msk [vmem:[#allocation3 + $0xe0] sm:$0xff] %vm22_vm0, %v1142_v9  ;;  %v1107_v53 = vpop.xlane.xlu0 %1106  ;;  %1811 = vrcp.f32 %v1540_v22 }
 0x266   :  { %v1110_v33 = vpop.xlane.xlu1 %1109  ;;  %v1143_v58 = vadd.f32 %v1107_v53, %v1015_v12  ;;  %v1541_v53 = vld [vmem:[#allocation3 + $0x38] sm:$0xff] }
 0x267   :  { %v1144_v43 = vadd.f32 %v1110_v33, %v1016_v35  ;;  %v1185_v35 = vld [vmem:[#allocation4 + $0x30] sm:$0xff]  ;;  %v1800_v33 = vpop.eup %1799  ;;  %1813 = vrcp.f32 %v1541_v53  ;;  %v1190_v53 = vld [vmem:[#allocation4 + $0x58] sm:$0xff] }
 0x268   :  { %1176 = vst.msk [vmem:[#allocation3 + $0xe8] sm:$0xff] %vm22_vm0, %v1143_v58  ;;  %v1542_v58 = vld [vmem:[#allocation3 + $0x40] sm:$0xff]  ;;  %v1217_v51 = vmul.f32 %v3131_v46, %v1185_v35  ;;  %v1802_v49 = vpop.eup %1801 }
 0x269   :  { %1177 = vst.msk [vmem:[#allocation3 + $0xf0] sm:$0xff] %vm22_vm0, %v1144_v43  ;;  %v1113_v30 = vpop.xlane.xlu0 %1112  ;;  %1815 = vrcp.f32 %v1542_v58  ;;  %v1804_v26 = vpop.eup %1803  ;;  %v1191_v58 = vld [vmem:[#allocation4 + $0x60] sm:$0xff] }
 0x26a   :  { %v1309_v17 = vpop.xlane.xlu1 %1308  ;;  %v1145_v41 = vadd.f32 %v1113_v30, %v1017_v29  ;;  %v1187_v30 = vld [vmem:[#allocation4 + $0x40] sm:$0xff] }
 0x26b   :  { %v1403_v23 = vadd.f32 %v1309_v17, %v1211_v55  ;;  %v1543_v17 = vld [vmem:[#allocation3 + $0x48] sm:$0xff] }
 0x26c   :  { %1178 = vst.msk [vmem:[#allocation3 + $0xf8] sm:$0xff] %vm22_vm0, %v1145_v41  ;;  %1817 = vrcp.f32 %v1543_v17  ;;  %v1806_v63 = vpop.eup %1805  ;;  %v1192_v17 = vld [vmem:[#allocation4 + $0x68] sm:$0xff] }
 0x26d   :  { %1435 = vst.msk [vmem:[#allocation4] sm:$0xff] %vm22_vm0, %v1403_v23  ;;  %v1312_v2 = vpop.xlane.xlu0 %1311  ;;  %1819 = vrcp.f32 %v1544_v3  ;;  %v1808_v22 = vpop.eup %1807 }
 0x26e   :  { %v1315_v18 = vpop.xlane.xlu1 %1314  ;;  %v1404_v62 = vadd.f32 %v1312_v2, %v1212_v20 }
 0x26f   :  { %v1405_v8 = vadd.f32 %v1315_v18, %v1213_v13  ;;  %v1219_v13 = vmul.f32 %v3145_v4, %v1187_v30  ;;  %v1223_v30 = vmul.f32 %v3173_v45, %v1191_v58 }
 0x270   :  { %1436 = vst.msk [vmem:[#allocation4 + $0x8] sm:$0xff] %vm22_vm0, %v1404_v62 }
 0x271   :  { %1437 = vst.msk [vmem:[#allocation4 + $0x10] sm:$0xff] %vm22_vm0, %v1405_v8  ;;  %v1318_v9 = vpop.xlane.xlu0 %1317  ;;  %v1545_v8 = vld [vmem:[#allocation3 + $0x58] sm:$0xff] }
 0x272   :  { %v1321_v28 = vpop.xlane.xlu1 %1320  ;;  %v1406_v12 = vadd.f32 %v1318_v9, %v1214_v25  ;;  %v1546_v25 = vld [vmem:[#allocation3 + $0x60] sm:$0xff]  ;;  %1821 = vrcp.f32 %v1545_v8 }
 0x273   :  { %v1407_v59 = vadd.f32 %v1321_v28, %v1215_v47  ;;  %1823 = vrcp.f32 %v1546_v25 }
 0x274   :  { %v1502_v54 = vld [vmem:[#allocation4] sm:$0xff]  ;;  %1438 = vst.msk [vmem:[#allocation4 + $0x18] sm:$0xff] %vm22_vm0, %v1406_v12  ;;  %v1221_v12 = vmul.f32 %v3159_v0, %v1189_v50  ;;  %v1194_v50 = vld [vmem:[#allocation4 + $0x78] sm:$0xff] }
 0x275   :  { %v1567_v36 = vmul.f32 %v1800_v33, %v1502_v54  ;;  %1439 = vst.msk [vmem:[#allocation4 + $0x20] sm:$0xff] %vm22_vm0, %v1407_v59  ;;  %v1324_v43 = vpop.xlane.xlu0 %1323  ;;  %v1810_v54 = vpop.eup %1809 }
 0x276   :  { %v1327_v29 = vpop.xlane.xlu1 %1326  ;;  %v1408_v55 = vadd.f32 %v1324_v43, %v1216_v10  ;;  %v1547_v10 = vld [vmem:[#allocation3 + $0x68] sm:$0xff] }
 0x277   :  { %1630 = vst.msk [vmem:[%s3486_s4] sm:$0xff] %vm22_vm0, %v1567_v36  ;;  %v1503_v16 = vld [vmem:[#allocation4 + $0x8] sm:$0xff]  ;;  %v1409_v41 = vadd.f32 %v1327_v29, %v1217_v51  ;;  %v1812_v36 = vpop.eup %1811  ;;  %v1548_v51 = vld [vmem:[#allocation3 + $0x70] sm:$0xff]  ;;  %v1222_v29 = vmul.f32 %v3166_v37, %v1190_v53  ;;  %1825 = vrcp.f32 %v1547_v10 }
 0x278   :  { %v1504_v23 = vld [vmem:[#allocation4 + $0x10] sm:$0xff]  ;;  %v1569_v46 = vmul.f32 %v1802_v49, %v1503_v16  ;;  %1440 = vst.msk [vmem:[#allocation4 + $0x28] sm:$0xff] %vm22_vm0, %v1408_v55  ;;  %v1814_v3 = vpop.eup %1813  ;;  %1827 = vrcp.f32 %v1548_v51 }
 0x279   :  { %v1571_v20 = vmul.f32 %v1804_v26, %v1504_v23  ;;  %1441 = vst.msk [vmem:[#allocation4 + $0x30] sm:$0xff] %vm22_vm0, %v1409_v41  ;;  %v1330_v2 = vpop.xlane.xlu0 %1329  ;;  %v1193_v26 = vld [vmem:[#allocation4 + $0x70] sm:$0xff]  ;;  %v1549_v23 = vld [vmem:[#allocation3 + $0x78] sm:$0xff] }
 0x27a   :  { %1631 = vst.msk [vmem:[%s3486_s4 + $0x8] sm:$0xff] %vm22_vm0, %v1569_v46  ;;  %v1333_v18 = vpop.xlane.xlu1 %1332  ;;  %v1410_v62 = vadd.f32 %v1330_v2, %v1218_v40  ;;  %v1816_v46 = vpop.eup %1815  ;;  %v1550_v40 = vld [vmem:[#allocation3 + $0x80] sm:$0xff]  ;;  %v1224_v2 = vmul.f32 %v3180_v42, %v1192_v17  ;;  %1829 = vrcp.f32 %v1549_v23 }
 0x27b   :  { %1632 = vst.msk [vmem:[%s3486_s4 + $0x10] sm:$0xff] %vm22_vm0, %v1571_v20  ;;  %v1505_v38 = vld [vmem:[#allocation4 + $0x18] sm:$0xff]  ;;  %v1411_v4 = vadd.f32 %v1333_v18, %v1219_v13  ;;  %v1225_v18 = vmul.f32 %v3187_v56, %v1193_v26  ;;  %1831 = vrcp.f32 %v1550_v40 }
 0x27c   :  { %v1506_v47 = vld [vmem:[#allocation4 + $0x20] sm:$0xff]  ;;  %v1573_v9 = vmul.f32 %v1806_v63, %v1505_v38  ;;  %1442 = vst.msk [vmem:[#allocation4 + $0x38] sm:$0xff] %vm22_vm0, %v1410_v62 }
 0x27d   :  { %v1575_v28 = vmul.f32 %v1808_v22, %v1506_v47  ;;  %1443 = vst.msk [vmem:[#allocation4 + $0x40] sm:$0xff] %vm22_vm0, %v1411_v4  ;;  %v1336_v35 = vpop.xlane.xlu0 %1335  ;;  %v1195_v38 = vld [vmem:[#allocation4 + $0x80] sm:$0xff]  ;;  %v1818_v4 = vpop.eup %1817  ;;  %v1551_v22 = vld [vmem:[#allocation3 + $0x88] sm:$0xff]  ;;  %v1552_v47 = vld [vmem:[#allocation3 + $0x90] sm:$0xff] }
 0x27e   :  { %1633 = vst.msk [vmem:[%s3486_s4 + $0x18] sm:$0xff] %vm22_vm0, %v1573_v9  ;;  %v1339_v59 = vpop.xlane.xlu1 %1338  ;;  %v1412_v33 = vadd.f32 %v1336_v35, %v1220_v1  ;;  %v1820_v25 = vpop.eup %1819  ;;  %v1227_v35 = vmul.f32 %v3201_v19, %v1195_v38  ;;  %1833 = vrcp.f32 %v1551_v22 }
 0x27f   :  { %1634 = vst.msk [vmem:[%s3486_s4 + $0x20] sm:$0xff] %vm22_vm0, %v1575_v28  ;;  %v1507_v6 = vld [vmem:[#allocation4 + $0x28] sm:$0xff]  ;;  %v1413_v0 = vadd.f32 %v1339_v59, %v1221_v12  ;;  %v1226_v28 = vmul.f32 %v3194_v14, %v1194_v50  ;;  %v1822_v10 = vpop.eup %1821  ;;  %1835 = vrcp.f32 %v1552_v47  ;;  %v1201_v50 = vld [vmem:[#allocation4 + $0xb0] sm:$0xff] }
 0x280   :  { %v1508_v43 = vld [vmem:[#allocation4 + $0x30] sm:$0xff]  ;;  %v1577_v5 = vmul.f32 %v1810_v54, %v1507_v6  ;;  %1444 = vst.msk [vmem:[#allocation4 + $0x48] sm:$0xff] %vm22_vm0, %v1412_v33  ;;  %v1196_v59 = vld [vmem:[#allocation4 + $0x88] sm:$0xff]  ;;  %v1553_v6 = vld [vmem:[#allocation3 + $0x98] sm:$0xff]  ;;  %v1233_v47 = vmul.f32 %v3243_v61, %v1201_v50 }
 0x281   :  { %v1579_v55 = vmul.f32 %v1812_v36, %v1508_v43  ;;  %1445 = vst.msk [vmem:[#allocation4 + $0x50] sm:$0xff] %vm22_vm0, %v1413_v0  ;;  %v1342_v49 = vpop.xlane.xlu0 %1341  ;;  %v1197_v54 = vld [vmem:[#allocation4 + $0x90] sm:$0xff]  ;;  %v1824_v0 = vpop.eup %1823  ;;  %v1554_v36 = vld [vmem:[#allocation3 + $0xa0] sm:$0xff]  ;;  %1837 = vrcp.f32 %v1553_v6 }
 0x282   :  { %1635 = vst.msk [vmem:[%s3486_s4 + $0x28] sm:$0xff] %vm22_vm0, %v1577_v5  ;;  %v1345_v16 = vpop.xlane.xlu1 %1344  ;;  %v1414_v41 = vadd.f32 %v1342_v49, %v1222_v29  ;;  %v1228_v5 = vmul.f32 %v3208_v60, %v1196_v59  ;;  %v1198_v49 = vld [vmem:[#allocation4 + $0x98] sm:$0xff]  ;;  %1839 = vrcp.f32 %v1554_v36  ;;  %v1559_v59 = vld [vmem:[#allocation3 + $0xc8] sm:$0xff] }
 0x283   :  { %1636 = vst.msk [vmem:[%s3486_s4 + $0x30] sm:$0xff] %vm22_vm0, %v1579_v55  ;;  %v1509_v37 = vld [vmem:[#allocation4 + $0x38] sm:$0xff]  ;;  %v1415_v45 = vadd.f32 %v1345_v16, %v1223_v30  ;;  %v1229_v55 = vmul.f32 %v3215_v31, %v1197_v54  ;;  %v1230_v40 = vmul.f32 %v3222_v15, %v1198_v49  ;;  %v1204_v36 = vld [vmem:[#allocation4 + $0xc8] sm:$0xff]  ;;  %v1562_v49 = vld [vmem:[#allocation3 + $0xe0] sm:$0xff] }
 0x284   :  { %v1510_v20 = vld [vmem:[#allocation4 + $0x40] sm:$0xff]  ;;  %v1581_v13 = vmul.f32 %v1814_v3, %v1509_v37  ;;  %1446 = vst.msk [vmem:[#allocation4 + $0x58] sm:$0xff] %vm22_vm0, %v1414_v41  ;;  %v1826_v26 = vpop.eup %1825  ;;  %v1555_v3 = vld [vmem:[#allocation3 + $0xa8] sm:$0xff]  ;;  %v1556_v37 = vld [vmem:[#allocation3 + $0xb0] sm:$0xff] }
 0x285   :  { %v1583_v52 = vmul.f32 %v1816_v46, %v1510_v20  ;;  %1447 = vst.msk [vmem:[#allocation4 + $0x60] sm:$0xff] %vm22_vm0, %v1415_v45  ;;  %v1348_v62 = vpop.xlane.xlu0 %1347  ;;  %v1199_v41 = vld [vmem:[#allocation4 + $0xa0] sm:$0xff]  ;;  %v1828_v23 = vpop.eup %1827  ;;  %1841 = vrcp.f32 %v1555_v3 }
 0x286   :  { %1637 = vst.msk [vmem:[%s3486_s4 + $0x38] sm:$0xff] %vm22_vm0, %v1581_v13  ;;  %v1351_v63 = vpop.xlane.xlu1 %1350  ;;  %v1416_v8 = vadd.f32 %v1348_v62, %v1224_v2  ;;  %v1231_v13 = vmul.f32 %v3229_v7, %v1199_v41  ;;  %1843 = vrcp.f32 %v1556_v37  ;;  %v1236_v41 = vmul.f32 %v3258_v57, %v1204_v36 }
 0x287   :  { %1638 = vst.msk [vmem:[%s3486_s4 + $0x40] sm:$0xff] %vm22_vm0, %v1583_v52  ;;  %v1511_v42 = vld [vmem:[#allocation4 + $0x48] sm:$0xff]  ;;  %v1417_v56 = vadd.f32 %v1351_v63, %v1225_v18  ;;  %v1830_v63 = vpop.eup %1829 }
 0x288   :  { %v1512_v9 = vld [vmem:[#allocation4 + $0x50] sm:$0xff]  ;;  %v1585_v1 = vmul.f32 %v1818_v4, %v1511_v42  ;;  %1448 = vst.msk [vmem:[#allocation4 + $0x68] sm:$0xff] %vm22_vm0, %v1416_v8  ;;  %v1200_v52 = vld [vmem:[#allocation4 + $0xa8] sm:$0xff]  ;;  %v1557_v8 = vld [vmem:[#allocation3 + $0xb8] sm:$0xff]  ;;  %v1832_v38 = vpop.eup %1831 }
 0x289   :  { %v1587_v12 = vmul.f32 %v1820_v25, %v1512_v9  ;;  %1449 = vst.msk [vmem:[#allocation4 + $0x70] sm:$0xff] %vm22_vm0, %v1417_v56  ;;  %v1354_v53 = vpop.xlane.xlu0 %1353  ;;  %v1558_v4 = vld [vmem:[#allocation3 + $0xc0] sm:$0xff]  ;;  %v1232_v56 = vmul.f32 %v3236_v34, %v1200_v52  ;;  %1845 = vrcp.f32 %v1557_v8  ;;  %v1208_v8 = vld [vmem:[#allocation4 + $0xe8] sm:$0xff] }
 0x28a   :  { %1639 = vst.msk [vmem:[%s3486_s4 + $0x48] sm:$0xff] %vm22_vm0, %v1585_v1  ;;  %v1357_v33 = vpop.xlane.xlu1 %1356  ;;  %v1418_v58 = vadd.f32 %v1354_v53, %v1226_v28  ;;  %v1202_v1 = vld [vmem:[#allocation4 + $0xb8] sm:$0xff]  ;;  %1847 = vrcp.f32 %v1558_v4 }
 0x28b   :  { %1640 = vst.msk [vmem:[%s3486_s4 + $0x50] sm:$0xff] %vm22_vm0, %v1587_v12  ;;  %v1513_v14 = vld [vmem:[#allocation4 + $0x58] sm:$0xff]  ;;  %v1419_v19 = vadd.f32 %v1357_v33, %v1227_v35  ;;  %v1203_v35 = vld [vmem:[#allocation4 + $0xc0] sm:$0xff]  ;;  %v1834_v53 = vpop.eup %1833  ;;  %v1234_v6 = vmul.f32 %v3250_v48, %v1202_v1  ;;  %1849 = vrcp.f32 %v1559_v59 }
 0x28c   :  { %v1514_v51 = vld [vmem:[#allocation4 + $0x60] sm:$0xff]  ;;  %v1589_v43 = vmul.f32 %v1822_v10, %v1513_v14  ;;  %1450 = vst.msk [vmem:[#allocation4 + $0x78] sm:$0xff] %vm22_vm0, %v1418_v58  ;;  %v1836_v33 = vpop.eup %1835  ;;  %v1560_v58 = vld [vmem:[#allocation3 + $0xd0] sm:$0xff] }
 0x28d   :  { %v1591_v29 = vmul.f32 %v1824_v0, %v1514_v51  ;;  %1451 = vst.msk [vmem:[#allocation4 + $0x80] sm:$0xff] %vm22_vm0, %v1419_v19  ;;  %v1360_v30 = vpop.xlane.xlu0 %1359  ;;  %v1235_v19 = vmul.f32 %v3254_v44, %v1203_v35  ;;  %1851 = vrcp.f32 %v1560_v58 }
 0x28e   :  { %1641 = vst.msk [vmem:[%s3486_s4 + $0x58] sm:$0xff] %vm22_vm0, %v1589_v43  ;;  %v1363_v17 = vpop.xlane.xlu1 %1362  ;;  %v1420_v16 = vadd.f32 %v1360_v30, %v1228_v5  ;;  %v1205_v5 = vld [vmem:[#allocation4 + $0xd0] sm:$0xff] }
 0x28f   :  { %1642 = vst.msk [vmem:[%s3486_s4 + $0x60] sm:$0xff] %vm22_vm0, %v1591_v29  ;;  %v1515_v60 = vld [vmem:[#allocation4 + $0x68] sm:$0xff]  ;;  %v1421_v31 = vadd.f32 %v1363_v17, %v1229_v55  ;;  %v1838_v29 = vpop.eup %1837  ;;  %v1561_v55 = vld [vmem:[#allocation3 + $0xd8] sm:$0xff]  ;;  %v1237_v3 = vmul.f32 %v3262_v11, %v1205_v5 }
 0x290   :  { %v1516_v45 = vld [vmem:[#allocation4 + $0x70] sm:$0xff]  ;;  %v1593_v46 = vmul.f32 %v1826_v26, %v1515_v60  ;;  %1452 = vst.msk [vmem:[#allocation4 + $0x88] sm:$0xff] %vm22_vm0, %v1420_v16  ;;  %v1840_v30 = vpop.eup %1839  ;;  %1853 = vrcp.f32 %v1561_v55 }
 0x291   :  { %v1595_v20 = vmul.f32 %v1828_v23, %v1516_v45  ;;  %1453 = vst.msk [vmem:[#allocation4 + $0x90] sm:$0xff] %vm22_vm0, %v1421_v31  ;;  %v1366_v2 = vpop.xlane.xlu0 %1365  ;;  %v1206_v31 = vld [vmem:[#allocation4 + $0xd8] sm:$0xff]  ;;  %v1207_v45 = vld [vmem:[#allocation4 + $0xe0] sm:$0xff]  ;;  %1855 = vrcp.f32 %v1562_v49 }
 0x292   :  { %1643 = vst.msk [vmem:[%s3486_s4 + $0x68] sm:$0xff] %vm22_vm0, %v1593_v46  ;;  %v1369_v18 = vpop.xlane.xlu1 %1368  ;;  %v1422_v62 = vadd.f32 %v1366_v2, %v1230_v40  ;;  %v1842_v46 = vpop.eup %1841  ;;  %v1563_v40 = vld [vmem:[#allocation3 + $0xe8] sm:$0xff]  ;;  %v1239_v50 = vmul.f32 %v3270_v21, %v1207_v45 }
 0x293   :  { %1644 = vst.msk [vmem:[%s3486_s4 + $0x70] sm:$0xff] %vm22_vm0, %v1595_v20  ;;  %v1517_v15 = vld [vmem:[#allocation4 + $0x78] sm:$0xff]  ;;  %v1423_v7 = vadd.f32 %v1369_v18, %v1231_v13  ;;  %v1844_v20 = vpop.eup %1843  ;;  %v1564_v13 = vld [vmem:[#allocation3 + $0xf0] sm:$0xff]  ;;  %v1238_v18 = vmul.f32 %v3266_v24, %v1206_v31  ;;  %1857 = vrcp.f32 %v1563_v40 }
 0x294   :  { %v1518_v22 = vld [vmem:[#allocation4 + $0x80] sm:$0xff]  ;;  %v1597_v42 = vmul.f32 %v1830_v63, %v1517_v15  ;;  %1454 = vst.msk [vmem:[#allocation4 + $0x98] sm:$0xff] %vm22_vm0, %v1422_v62  ;;  %1859 = vrcp.f32 %v1564_v13 }
 0x295   :  { %v1599_v25 = vmul.f32 %v1832_v38, %v1518_v22  ;;  %1455 = vst.msk [vmem:[#allocation4 + $0xa0] sm:$0xff] %vm22_vm0, %v1423_v7  ;;  %v1372_v9 = vpop.xlane.xlu0 %1371  ;;  %v1209_v38 = vld [vmem:[#allocation4 + $0xf0] sm:$0xff]  ;;  %v1565_v22 = vld [vmem:[#allocation3 + $0xf8] sm:$0xff] }
 0x296   :  { %1645 = vst.msk [vmem:[%s3486_s4 + $0x78] sm:$0xff] %vm22_vm0, %v1597_v42  ;;  %v1375_v28 = vpop.xlane.xlu1 %1374  ;;  %v1424_v12 = vadd.f32 %v1372_v9, %v1232_v56  ;;  %v1846_v4 = vpop.eup %1845  ;;  %v1241_v1 = vmul.f32 %v3278_v39, %v1209_v38  ;;  %1861 = vrcp.f32 %v1565_v22 }
 0x297   :  { %1646 = vst.msk [vmem:[%s3486_s4 + $0x80] sm:$0xff] %vm22_vm0, %v1599_v25  ;;  %v1519_v34 = vld [vmem:[#allocation4 + $0x88] sm:$0xff]  ;;  %v1425_v61 = vadd.f32 %v1375_v28, %v1233_v47  ;;  %v1848_v42 = vpop.eup %1847  ;;  %v1240_v47 = vmul.f32 %v3274_v32, %v1208_v8 }
 0x298   :  { %v1520_v54 = vld [vmem:[#allocation4 + $0x90] sm:$0xff]  ;;  %v1601_v10 = vmul.f32 %v1834_v53, %v1519_v34  ;;  %1456 = vst.msk [vmem:[#allocation4 + $0xa8] sm:$0xff] %vm22_vm0, %v1424_v12  ;;  %v1210_v12 = vld [vmem:[#allocation4 + $0xf8] sm:$0xff]  ;;  %v1850_v59 = vpop.eup %1849 }
 0x299   :  { %v1603_v14 = vmul.f32 %v1836_v33, %v1520_v54  ;;  %1457 = vst.msk [vmem:[#allocation4 + $0xb0] sm:$0xff] %vm22_vm0, %v1425_v61  ;;  %v1378_v0 = vpop.xlane.xlu0 %1377  ;;  %v1242_v58 = vmul.f32 %v3282_v27, %v1210_v12 }
 0x29a   :  { %1647 = vst.msk [vmem:[%s3486_s4 + $0x88] sm:$0xff] %vm22_vm0, %v1601_v10  ;;  %v1381_v51 = vpop.xlane.xlu1 %1380  ;;  %v1426_v43 = vadd.f32 %v1378_v0, %v1234_v6  ;;  %v1852_v61 = vpop.eup %1851 }
 0x29b   :  { %1648 = vst.msk [vmem:[%s3486_s4 + $0x90] sm:$0xff] %vm22_vm0, %v1603_v14  ;;  %v1521_v48 = vld [vmem:[#allocation4 + $0x98] sm:$0xff]  ;;  %v1427_v44 = vadd.f32 %v1381_v51, %v1235_v19 }
 0x29c   :  { %v1522_v17 = vld [vmem:[#allocation4 + $0xa0] sm:$0xff]  ;;  %v1605_v16 = vmul.f32 %v1838_v29, %v1521_v48  ;;  %1458 = vst.msk [vmem:[#allocation4 + $0xb8] sm:$0xff] %vm22_vm0, %v1426_v43 }
 0x29d   :  { %v1607_v26 = vmul.f32 %v1840_v30, %v1522_v17  ;;  %1459 = vst.msk [vmem:[#allocation4 + $0xc0] sm:$0xff] %vm22_vm0, %v1427_v44  ;;  %v1384_v60 = vpop.xlane.xlu0 %1383  ;;  %v1854_v14 = vpop.eup %1853 }
 0x29e   :  { %1649 = vst.msk [vmem:[%s3486_s4 + $0x98] sm:$0xff] %vm22_vm0, %v1605_v16  ;;  %v1387_v23 = vpop.xlane.xlu1 %1386  ;;  %v1428_v37 = vadd.f32 %v1384_v60, %v1236_v41  ;;  %v1856_v0 = vpop.eup %1855 }
 0x29f   :  { %1650 = vst.msk [vmem:[%s3486_s4 + $0xa0] sm:$0xff] %vm22_vm0, %v1607_v26  ;;  %v1523_v57 = vld [vmem:[#allocation4 + $0xa8] sm:$0xff]  ;;  %v1429_v11 = vadd.f32 %v1387_v23, %v1237_v3 }
 0x2a0   :  { %v1524_v2 = vld [vmem:[#allocation4 + $0xb0] sm:$0xff]  ;;  %v1609_v52 = vmul.f32 %v1842_v46, %v1523_v57  ;;  %1460 = vst.msk [vmem:[#allocation4 + $0xc8] sm:$0xff] %vm22_vm0, %v1428_v37  ;;  %v1858_v43 = vpop.eup %1857 }
 0x2a1   :  { %v1611_v62 = vmul.f32 %v1844_v20, %v1524_v2  ;;  %1461 = vst.msk [vmem:[#allocation4 + $0xd0] sm:$0xff] %vm22_vm0, %v1429_v11  ;;  %v1390_v63 = vpop.xlane.xlu0 %1389  ;;  %v1860_v29 = vpop.eup %1859 }
 0x2a2   :  { %1651 = vst.msk [vmem:[%s3486_s4 + $0xa8] sm:$0xff] %vm22_vm0, %v1609_v52  ;;  %v1393_v15 = vpop.xlane.xlu1 %1392  ;;  %v1430_v7 = vadd.f32 %v1390_v63, %v1238_v18 }
 0x2a3   :  { %1652 = vst.msk [vmem:[%s3486_s4 + $0xb0] sm:$0xff] %vm22_vm0, %v1611_v62  ;;  %v1525_v24 = vld [vmem:[#allocation4 + $0xb8] sm:$0xff]  ;;  %v1431_v21 = vadd.f32 %v1393_v15, %v1239_v50  ;;  %v1862_v30 = vpop.eup %1861 }
 0x2a4   :  { %v1526_v56 = vld [vmem:[#allocation4 + $0xc0] sm:$0xff]  ;;  %v1613_v25 = vmul.f32 %v1846_v4, %v1525_v24  ;;  %1462 = vst.msk [vmem:[#allocation4 + $0xd8] sm:$0xff] %vm22_vm0, %v1430_v7 }
 0x2a5   :  { %v1615_v9 = vmul.f32 %v1848_v42, %v1526_v56  ;;  %1463 = vst.msk [vmem:[#allocation4 + $0xe0] sm:$0xff] %vm22_vm0, %v1431_v21  ;;  %v1396_v28 = vpop.xlane.xlu0 %1395 }
 0x2a6   :  { %1653 = vst.msk [vmem:[%s3486_s4 + $0xb8] sm:$0xff] %vm22_vm0, %v1613_v25  ;;  %v1399_v35 = vpop.xlane.xlu1 %1398  ;;  %v1432_v53 = vadd.f32 %v1396_v28, %v1240_v47 }
 0x2a7   :  { %1654 = vst.msk [vmem:[%s3486_s4 + $0xc0] sm:$0xff] %vm22_vm0, %v1615_v9  ;;  %v1527_v32 = vld [vmem:[#allocation4 + $0xc8] sm:$0xff]  ;;  %v1433_v34 = vadd.f32 %v1399_v35, %v1241_v1 }
 0x2a8   :  { %v1528_v39 = vld [vmem:[#allocation4 + $0xd0] sm:$0xff]  ;;  %v1617_v33 = vmul.f32 %v1850_v59, %v1527_v32  ;;  %1464 = vst.msk [vmem:[#allocation4 + $0xe8] sm:$0xff] %vm22_vm0, %v1432_v53 }
 0x2a9   :  { %v1619_v54 = vmul.f32 %v1852_v61, %v1528_v39  ;;  %1465 = vst.msk [vmem:[#allocation4 + $0xf0] sm:$0xff] %vm22_vm0, %v1433_v34  ;;  %v1402_v10 = vpop.xlane.xlu0 %1401 }
 0x2aa   :  { %1655 = vst.msk [vmem:[%s3486_s4 + $0xc8] sm:$0xff] %vm22_vm0, %v1617_v33  ;;  %v1434_v6 = vadd.f32 %v1402_v10, %v1242_v58 }
 0x2ab   :  { %1656 = vst.msk [vmem:[%s3486_s4 + $0xd0] sm:$0xff] %vm22_vm0, %v1619_v54  ;;  %v1529_v19 = vld [vmem:[#allocation4 + $0xd8] sm:$0xff] }
 0x2ac   :  { %v1530_v36 = vld [vmem:[#allocation4 + $0xe0] sm:$0xff]  ;;  %v1621_v27 = vmul.f32 %v1854_v14, %v1529_v19  ;;  %1466 = vst.msk [vmem:[#allocation4 + $0xf8] sm:$0xff] %vm22_vm0, %v1434_v6 }
 0x2ad   :  { %v1623_v51 = vmul.f32 %v1856_v0, %v1530_v36 }
 0x2ae   :  { %1657 = vst.msk [vmem:[%s3486_s4 + $0xd8] sm:$0xff] %vm22_vm0, %v1621_v27 }
 0x2af   :  { %1658 = vst.msk [vmem:[%s3486_s4 + $0xe0] sm:$0xff] %vm22_vm0, %v1623_v51  ;;  %v1531_v5 = vld [vmem:[#allocation4 + $0xe8] sm:$0xff] }
 0x2b0   :  { %v1532_v55 = vld [vmem:[#allocation4 + $0xf0] sm:$0xff]  ;;  %v1625_v48 = vmul.f32 %v1858_v43, %v1531_v5 }
 0x2b1   :  { %v1627_v44 = vmul.f32 %v1860_v29, %v1532_v55 }
 0x2b2   :  { %1659 = vst.msk [vmem:[%s3486_s4 + $0xe8] sm:$0xff] %vm22_vm0, %v1625_v48 }
 0x2b3   :  { %1660 = vst.msk [vmem:[%s3486_s4 + $0xf0] sm:$0xff] %vm22_vm0, %v1627_v44  ;;  %v1533_v49 = vld [vmem:[#allocation4 + $0xf8] sm:$0xff] }
 0x2b4   :  { %v1629_v17 = vmul.f32 %v1862_v30, %v1533_v49 }
 0x2b6   :  { %1661 = vst.msk [vmem:[%s3486_s4 + $0xf8] sm:$0xff] %vm22_vm0, %v1629_v17 }

</bundles_post_ra>
